<compile_context>
chip_gen: v7x
topology: tpu7x:2x2x1
jax: 0.10.0
libtpu: 0.0.40
codegen_flags: <defaults>
</compile_context>

<pallas_src>
import functools

import jax
import jax.numpy as jnp
from jax import lax
from jax.experimental import pallas as pl
from jax.experimental.pallas import tpu as pltpu

_K = 7     # Conv1d kernel size
_PAD = 3   # Conv1d padding


def _round_up(x, m):
    return (x + m - 1) // m * m


def _elu(x):
    # exp only on the non-positive branch (avoids inf in the unused branch).
    return jnp.where(x > 0.0, x, jnp.exp(jnp.minimum(x, 0.0)) - 1.0)


def fused_forward_kernel(cfg, *refs):
    TB = cfg["TB"]
    H = cfg["H"]
    T = cfg["T"]
    nconv = cfg["nconv"]
    nlayers = cfg["nlayers"]
    Ls = cfg["Ls"]          # conv input length per layer
    Lsegs = cfg["Lsegs"]    # padded, 8-aligned per-sample segment length per layer
    G = 3 * H

    it = iter(refs)
    x_ref = next(it)                                                    # (TB, L0, C0) f32
    conv_refs = [(next(it), next(it)) for _ in range(nconv)]            # (wk bf16, aux f32)
    gru_refs = [(next(it), next(it), next(it)) for _ in range(nlayers)]  # (wih, whh, gb)
    outw_ref = next(it)                                                 # (H, n_out) bf16
    outb_ref = next(it)                                                 # (1, n_out) f32
    out_ref = next(it)                                                  # (TB, n_out) f32
    pad_refs = [next(it) for _ in range(nconv)]                         # (TB*Lseg_i, Cin_i) f32
    co_ref = next(it)                                                   # (TB*T, Cf) bf16, b-major
    xproj_ref = next(it)                                                # (TB*T, 3H) f32
    hout_ref = next(it)                                                 # (TB*T, H) bf16, t-major

    # ---- zero ONLY the halo / alignment-slack rows of the padded conv buffers ------------
    for i in range(nconv):
        L, Lseg = Ls[i], Lsegs[i]
        Cin = pad_refs[i].shape[1]
        tail = Lseg - L - _PAD
        for b in range(TB):
            base = b * Lseg
            pad_refs[i][pl.ds(base, _PAD), :] = jnp.zeros((_PAD, Cin), jnp.float32)
            pad_refs[i][pl.ds(base + _PAD + L, tail), :] = jnp.zeros((tail, Cin), jnp.float32)

    # ---- stage 0: channels-last input into padded scratch 0 ------------------------------
    for b in range(TB):
        pad_refs[0][pl.ds(b * Lsegs[0] + _PAD, Ls[0]), :] = x_ref[b]

    # ---- conv blocks: Conv1d + ELU + MaxPool1d(2,2) + BatchNorm1d(eval) -------------------
    # Batch is folded into matmul rows: all TB padded segments sit back-to-back in one flat
    # buffer, so each tap is ONE whole-layer matmul at even (and odd) window-start positions;
    # MaxPool is the max of the two accumulators (ELU after max is valid by monotonicity,
    # the per-channel conv bias commutes with the max).
    for i in range(nconv):
        wk_ref, aux_ref = conv_refs[i]
        Cout = wk_ref.shape[2]
        L, Lseg = Ls[i], Lsegs[i]
        L2 = L // 2
        half = (TB * Lseg) // 2 - _PAD      # even/odd window starts computed (covers all valid)
        acc_e = jnp.zeros((half, Cout), jnp.float32)
        acc_o = jnp.zeros((half, Cout), jnp.float32)
        for k in range(_K):
            wk = wk_ref[k]                                                   # (Cin, Cout) bf16
            xe = pad_refs[i][pl.ds(k, half, stride=2), :].astype(jnp.bfloat16)
            xo = pad_refs[i][pl.ds(k + 1, half, stride=2), :].astype(jnp.bfloat16)
            acc_e = acc_e + jnp.dot(xe, wk, preferred_element_type=jnp.float32)
            acc_o = acc_o + jnp.dot(xo, wk, preferred_element_type=jnp.float32)
        aux = aux_ref[...]                                                   # (3, Cout) f32
        h = jnp.maximum(acc_e, acc_o) + aux[0:1, :]     # conv bias, MaxPool fused
        h = _elu(h)
        h = h * aux[1:2, :] + aux[2:3, :]               # BN(eval); Dropout(eval) = identity
        for b in range(TB):
            row0 = b * (Lseg // 2)
            src = h[row0:row0 + L2, :]                  # valid rows of batch element b
            if i + 1 < nconv:
                pad_refs[i + 1][pl.ds(b * Lsegs[i + 1] + _PAD, L2), :] = src
            else:
                co_ref[pl.ds(b * T, T), :] = src.astype(jnp.bfloat16)   # b-major (row = b*T + t)

    # ---- GRU stack (batch_first, h0 = 0, PyTorch gate order r, z, n) -----------------------
    h_last = jnp.zeros((TB, H), jnp.float32)
    for l in range(nlayers):
        wih_ref, whh_ref, gb_ref = gru_refs[l]
        gb = gb_ref[...]                    # (1, 4H) f32 = [bi_r+bh_r | bi_z+bh_z | bi_n | bh_n]
        bi = gb[:, :G]
        bhn = gb[:, G:]
        whh = whh_ref[...]                  # (H, 3H) bf16
        # Whole-sequence input projection, ONE tall matmul per layer.  For layer 0 the model
        # Linear(C -> 2C) is already folded into wih (done once in prepare_params).
        src_ref = co_ref if l == 0 else hout_ref
        xproj_ref[...] = (jnp.dot(src_ref[...], wih_ref[...],
                                  preferred_element_type=jnp.float32) + bi)
        write_h = l + 1 < nlayers           # last layer only needs the final carry
        bmajor = (l == 0)                   # layer 0's projection rows are b-major

        def step(t, hprev, whh=whh, bhn=bhn, write_h=write_h, bmajor=bmajor):
            if bmajor:
                xp = xproj_ref[pl.ds(t, TB, stride=T), :]       # rows b*T + t
            else:
                xp = xproj_ref[pl.ds(t * TB, TB), :]            # rows t*TB + b (contiguous)
            hp = jnp.dot(hprev.astype(jnp.bfloat16), whh,
                         preferred_element_type=jnp.float32)    # (TB, 3H)
            g = xp + hp
            r = jax.nn.sigmoid(g[:, 0:H])
            z = jax.nn.sigmoid(g[:, H:2 * H])
            n = jnp.tanh(xp[:, 2 * H:] + r * (hp[:, 2 * H:] + bhn))
            h_new = (1.0 - z) * n + z * hprev
            if write_h:
                hout_ref[pl.ds(t * TB, TB), :] = h_new.astype(jnp.bfloat16)
            return h_new

        h_last = lax.fori_loop(0, T, step, jnp.zeros((TB, H), jnp.float32),
                               unroll=min(T, 8))

    # ---- output head: Linear(relu(out[:, -1])) --------------------------------------------
    out_ref[...] = (jnp.dot(jnp.maximum(h_last, 0.0).astype(jnp.bfloat16),
                            outw_ref[...], preferred_element_type=jnp.float32)
                    + outb_ref[...])


# ------------------------------ parameters ------------------------------------------------ #

def init_params(key, input_dim, conv_dims, hidden_dim, num_layers):
    def nrm(k, shape, scale=0.1):
        return scale * jax.random.normal(k, shape, jnp.float32)

    keys = iter(jax.random.split(key, 256))
    params = {"convs": [], "gru": []}
    prev = input_dim
    for dim in conv_dims:
        params["convs"].append(dict(
            w=nrm(next(keys), (dim, prev, _K)),
            b=nrm(next(keys), (dim,)),
            gamma=1.0 + nrm(next(keys), (dim,)),
            beta=nrm(next(keys), (dim,)),
            running_mean=nrm(next(keys), (dim,)),                     # BN eval statistics
            running_var=1.0 + 0.1 * jnp.abs(nrm(next(keys), (dim,))),
        ))
        prev = dim
    params["lin_w"] = nrm(next(keys), (prev * 2, prev))
    params["lin_b"] = nrm(next(keys), (prev * 2,))
    in_dim = prev * 2
    for _ in range(num_layers):
        params["gru"].append(dict(
            w_ih=nrm(next(keys), (3 * hidden_dim, in_dim)),
            w_hh=nrm(next(keys), (3 * hidden_dim, hidden_dim)),
            b_ih=nrm(next(keys), (3 * hidden_dim,)),
            b_hh=nrm(next(keys), (3 * hidden_dim,)),
        ))
        in_dim = hidden_dim
    params["out_w"] = nrm(next(keys), (4, hidden_dim))
    params["out_b"] = nrm(next(keys), (4,))
    return params


def prepare_params(params, eps=1e-5, weight_dtype=jnp.bfloat16):
    """One-time weight layout prep: transposes, BN folding, Linear->GRU0 folding, bf16 cast."""
    prep = {"convs": [], "gru": []}
    for c in params["convs"]:
        scale = c["gamma"] / jnp.sqrt(c["running_var"] + eps)
        shift = c["beta"] - c["running_mean"] * scale
        prep["convs"].append(dict(
            wk=jnp.transpose(c["w"], (2, 1, 0)).astype(weight_dtype),        # (K, Cin, Cout)
            aux=jnp.stack([c["b"], scale, shift], 0).astype(jnp.float32),    # (3, Cout)
        ))
    lin_wT = params["lin_w"].T.astype(jnp.float32)       # (Cf, 2Cf)
    lin_b = params["lin_b"].astype(jnp.float32)          # (2Cf,)
    for li, g in enumerate(params["gru"]):
        H = g["w_hh"].shape[1]
        wih_T = g["w_ih"].T.astype(jnp.float32)          # (D, 3H), cols [r | z | n]
        whh_T = g["w_hh"].T.astype(jnp.float32)          # (H, 3H)
        b_ih, b_hh = g["b_ih"], g["b_hh"]
        bi = jnp.concatenate([b_ih[:H] + b_hh[:H],       # r, z input+hidden biases pre-summed
                              b_ih[H:2 * H] + b_hh[H:2 * H],
                              b_ih[2 * H:]])
        bhn = b_hh[2 * H:]                               # stays inside r*(...) term
        if li == 0:
            # Fold the model Linear(C -> 2C) into the layer-0 input projection (both affine).
            bi = (lin_b @ wih_T) + bi
            wih_T = lin_wT @ wih_T                        # (Cf, 3H)
        gb = jnp.concatenate([bi, bhn]).reshape(1, 4 * H).astype(jnp.float32)
        prep["gru"].append(dict(wih=wih_T.astype(weight_dtype),
                                whh=whh_T.astype(weight_dtype),
                                gb=gb))
    prep["out_w"] = params["out_w"].T.astype(weight_dtype)        # (H, n_out)
    prep["out_b"] = params["out_b"].reshape(1, -1).astype(jnp.float32)
    return prep


# ------------------------------ forward ---------------------------------------------------- #

def _pick_batch_tile(B, per_sample_bytes, budget_bytes=12 * 1024 * 1024):
    # Candidates must divide B and (for a legal (TB, n_out) output block) be == B or a
    # multiple of 8.  Pick the largest candidate whose scratch fits the per-tile budget.
    cands = sorted(d for d in range(1, B + 1)
                   if B % d == 0 and (d == B or d % 8 == 0))
    best = cands[0]
    for d in cands:
        if d * per_sample_bytes <= budget_bytes:
            best = d
    return best


def forward(prep, x_ncl, *, batch_tile=None, vmem_limit_bytes=48 * 1024 * 1024):
    """x_ncl: (B, C_in, L) — same axis convention as the PyTorch module input."""
    B, C0, L0 = x_ncl.shape
    nconv = len(prep["convs"])
    nlayers = len(prep["gru"])
    if nconv == 0:
        raise NotImplementedError("at least one conv block is assumed (as in the reference model)")
    H = int(prep["gru"][0]["whh"].shape[0])
    n_out = int(prep["out_w"].shape[1])

    Ls = []
    L = L0
    for _ in range(nconv):
        if L % 2 != 0:
            raise ValueError("sequence length must stay even through every MaxPool1d(2,2)")
        Ls.append(L)
        L //= 2
    T = L
    Lsegs = [_round_up(l + 2 * _PAD, 8) for l in Ls]
    Cins = [C0] + [int(c["wk"].shape[2]) for c in prep["convs"][:-1]]
    Cf = int(prep["convs"][-1]["wk"].shape[2])

    # Per-sample VMEM scratch footprint -> batch tile choice (keeps v5e/v6e/v7x in budget).
    per_sample = sum(Lsegs[i] * Cins[i] * 4 for i in range(nconv))   # f32 padded conv buffers
    per_sample += T * Cf * 2 + T * 3 * H * 4 + T * H * 2             # conv_out / xproj / hout
    if batch_tile is None:
        batch_tile = _pick_batch_tile(B, per_sample)
    TB = batch_tile
    if B % TB != 0 or not (TB == B or TB % 8 == 0):
        raise ValueError("batch_tile must divide B and be either == B or a multiple of 8")
    nbt = B // TB

    x = jnp.transpose(x_ncl, (0, 2, 1)).astype(jnp.float32)          # (B, L0, C0) channels-last

    inputs = [x]
    in_specs = [pl.BlockSpec((TB, L0, C0), lambda i: (i, 0, 0))]

    def add_full(a):
        inputs.append(a)
        in_specs.append(pl.BlockSpec(a.shape, lambda i, nd=a.ndim: (0,) * nd))

    for c in prep["convs"]:
        add_full(c["wk"])
        add_full(c["aux"])
    for g in prep["gru"]:
        add_full(g["wih"])
        add_full(g["whh"])
        add_full(g["gb"])
    add_full(prep["out_w"])
    add_full(prep["out_b"])

    scratch = []
    for i in range(nconv):
        scratch.append(pltpu.VMEM((TB * Lsegs[i], Cins[i]), jnp.float32))   # padded activations
    scratch.append(pltpu.VMEM((TB * T, Cf), jnp.bfloat16))    # last conv output (b-major rows)
    scratch.append(pltpu.VMEM((TB * T, 3 * H), jnp.float32))  # per-layer GRU input projection
    scratch.append(pltpu.VMEM((TB * T, H), jnp.bfloat16))     # per-layer hidden sequence (t-major)

    cfg = dict(TB=TB, H=H, T=T, nconv=nconv, nlayers=nlayers,
               Ls=tuple(Ls), Lsegs=tuple(Lsegs))

    return pl.pallas_call(
        functools.partial(fused_forward_kernel, cfg),
        grid=(nbt,),
        out_shape=jax.ShapeDtypeStruct((B, n_out), jnp.float32),
        in_specs=in_specs,
        out_specs=pl.BlockSpec((TB, n_out), lambda i: (i, 0)),
        scratch_shapes=scratch,
        compiler_params=pltpu.CompilerParams(
            dimension_semantics=("parallel",),
            vmem_limit_bytes=vmem_limit_bytes),
    )(*inputs)


if __name__ == "__main__":
    key = jax.random.PRNGKey(0)
    k_params, k_x = jax.random.split(key)

    B, input_dim, L = 2, 4, 16
    conv_dims = [8, 16]
    hidden_dim, num_layers = 32, 2

    params = init_params(k_params, input_dim, conv_dims, hidden_dim, num_layers)
    prep = prepare_params(params)            # one-time layout prep, outside the call path
    x = jax.random.normal(k_x, (B, input_dim, L), jnp.float32)

    out = jax.jit(forward)(prep, x)
    jax.block_until_ready(out)
    assert out.shape == (B, 4) and out.dtype == jnp.float32
    print("KERNEL_OK")
</pallas_src>

<mosaic_0001>
module attributes {stable_mosaic.version = 11 : i64} {
  func.func @fused_forward_kernel(%arg0: i32, %arg1: memref<2x16x4xf32, #tpu.memory_space<vmem>>, %arg2: memref<7x4x8xbf16, #tpu.memory_space<vmem>>, %arg3: memref<3x8xf32, #tpu.memory_space<vmem>>, %arg4: memref<7x8x16xbf16, #tpu.memory_space<vmem>>, %arg5: memref<3x16xf32, #tpu.memory_space<vmem>>, %arg6: memref<16x96xbf16, #tpu.memory_space<vmem>>, %arg7: memref<32x96xbf16, #tpu.memory_space<vmem>>, %arg8: memref<1x128xf32, #tpu.memory_space<vmem>>, %arg9: memref<32x96xbf16, #tpu.memory_space<vmem>>, %arg10: memref<32x96xbf16, #tpu.memory_space<vmem>>, %arg11: memref<1x128xf32, #tpu.memory_space<vmem>>, %arg12: memref<32x4xbf16, #tpu.memory_space<vmem>>, %arg13: memref<1x4xf32, #tpu.memory_space<vmem>>, %arg14: memref<2x4xf32, #tpu.memory_space<vmem>>, %arg15: memref<48x4xf32, #tpu.memory_space<vmem>>, %arg16: memref<32x8xf32, #tpu.memory_space<vmem>>, %arg17: memref<8x16xbf16, #tpu.memory_space<vmem>>, %arg18: memref<8x96xf32, #tpu.memory_space<vmem>>, %arg19: memref<8x32xbf16, #tpu.memory_space<vmem>>) attributes {dimension_semantics = [#tpu.dimension_semantics<parallel>], iteration_bounds = array<i64: 1>, scalar_prefetch = 0 : i64, scratch_operands = 5 : i64, tpu.core_type = #tpu.core_type<tc>, window_params = [{transform_indices = @transform_0, window_bounds = array<i64: 2, 16, 4>}, {pipeline_mode = #tpu.pipeline_mode<synchronous>, transform_indices = @transform_1, window_bounds = array<i64: 7, 4, 8>}, {pipeline_mode = #tpu.pipeline_mode<synchronous>, transform_indices = @transform_2, window_bounds = array<i64: 3, 8>}, {pipeline_mode = #tpu.pipeline_mode<synchronous>, transform_indices = @transform_3, window_bounds = array<i64: 7, 8, 16>}, {pipeline_mode = #tpu.pipeline_mode<synchronous>, transform_indices = @transform_4, window_bounds = array<i64: 3, 16>}, {pipeline_mode = #tpu.pipeline_mode<synchronous>, transform_indices = @transform_5, window_bounds = array<i64: 16, 96>}, {pipeline_mode = #tpu.pipeline_mode<synchronous>, transform_indices = @transform_6, window_bounds = array<i64: 32, 96>}, {pipeline_mode = #tpu.pipeline_mode<synchronous>, transform_indices = @transform_7, window_bounds = array<i64: 1, 128>}, {pipeline_mode = #tpu.pipeline_mode<synchronous>, transform_indices = @transform_8, window_bounds = array<i64: 32, 96>}, {pipeline_mode = #tpu.pipeline_mode<synchronous>, transform_indices = @transform_9, window_bounds = array<i64: 32, 96>}, {pipeline_mode = #tpu.pipeline_mode<synchronous>, transform_indices = @transform_10, window_bounds = array<i64: 1, 128>}, {pipeline_mode = #tpu.pipeline_mode<synchronous>, transform_indices = @transform_11, window_bounds = array<i64: 32, 4>}, {pipeline_mode = #tpu.pipeline_mode<synchronous>, transform_indices = @transform_12, window_bounds = array<i64: 1, 4>}, {transform_indices = @transform_13, window_bounds = array<i64: 2, 4>}]} {
    %cst = arith.constant 0.000000e+00 : f32
    %0 = vector.broadcast %cst : f32 to vector<3x4xf32>
    %c0 = arith.constant 0 : index
    %c0_0 = arith.constant 0 : index
    %1 = vector.load %arg15[%c0, %c0_0] : memref<48x4xf32, #tpu.memory_space<vmem>>, vector<3x4xf32>
    tpu.vector_store %arg15[%c0, %c0_0], %0 {strides = array<i32>} : memref<48x4xf32, #tpu.memory_space<vmem>>, vector<3x4xf32>,
    %cst_1 = arith.constant 0.000000e+00 : f32
    %2 = vector.broadcast %cst_1 : f32 to vector<5x4xf32>
    %c19 = arith.constant 19 : index
    %c0_2 = arith.constant 0 : index
    %3 = vector.load %arg15[%c19, %c0_2] : memref<48x4xf32, #tpu.memory_space<vmem>>, vector<5x4xf32>
    tpu.vector_store %arg15[%c19, %c0_2], %2 {strides = array<i32>} : memref<48x4xf32, #tpu.memory_space<vmem>>, vector<5x4xf32>,
    %cst_3 = arith.constant 0.000000e+00 : f32
    %4 = vector.broadcast %cst_3 : f32 to vector<3x4xf32>
    %c24 = arith.constant 24 : index
    %c0_4 = arith.constant 0 : index
    %5 = vector.load %arg15[%c24, %c0_4] : memref<48x4xf32, #tpu.memory_space<vmem>>, vector<3x4xf32>
    tpu.vector_store %arg15[%c24, %c0_4], %4 {strides = array<i32>} : memref<48x4xf32, #tpu.memory_space<vmem>>, vector<3x4xf32>,
    %cst_5 = arith.constant 0.000000e+00 : f32
    %6 = vector.broadcast %cst_5 : f32 to vector<5x4xf32>
    %c43 = arith.constant 43 : index
    %c0_6 = arith.constant 0 : index
    %7 = vector.load %arg15[%c43, %c0_6] : memref<48x4xf32, #tpu.memory_space<vmem>>, vector<5x4xf32>
    tpu.vector_store %arg15[%c43, %c0_6], %6 {strides = array<i32>} : memref<48x4xf32, #tpu.memory_space<vmem>>, vector<5x4xf32>,
    %cst_7 = arith.constant 0.000000e+00 : f32
    %8 = vector.broadcast %cst_7 : f32 to vector<3x8xf32>
    %c0_8 = arith.constant 0 : index
    %c0_9 = arith.constant 0 : index
    %9 = vector.load %arg16[%c0_8, %c0_9] : memref<32x8xf32, #tpu.memory_space<vmem>>, vector<3x8xf32>
    tpu.vector_store %arg16[%c0_8, %c0_9], %8 {strides = array<i32>} : memref<32x8xf32, #tpu.memory_space<vmem>>, vector<3x8xf32>,
    %cst_10 = arith.constant 0.000000e+00 : f32
    %10 = vector.broadcast %cst_10 : f32 to vector<5x8xf32>
    %c11 = arith.constant 11 : index
    %c0_11 = arith.constant 0 : index
    %11 = vector.load %arg16[%c11, %c0_11] : memref<32x8xf32, #tpu.memory_space<vmem>>, vector<5x8xf32>
    tpu.vector_store %arg16[%c11, %c0_11], %10 {strides = array<i32>} : memref<32x8xf32, #tpu.memory_space<vmem>>, vector<5x8xf32>,
    %cst_12 = arith.constant 0.000000e+00 : f32
    %12 = vector.broadcast %cst_12 : f32 to vector<3x8xf32>
    %c16 = arith.constant 16 : index
    %c0_13 = arith.constant 0 : index
    %13 = vector.load %arg16[%c16, %c0_13] : memref<32x8xf32, #tpu.memory_space<vmem>>, vector<3x8xf32>
    tpu.vector_store %arg16[%c16, %c0_13], %12 {strides = array<i32>} : memref<32x8xf32, #tpu.memory_space<vmem>>, vector<3x8xf32>,
    %cst_14 = arith.constant 0.000000e+00 : f32
    %14 = vector.broadcast %cst_14 : f32 to vector<5x8xf32>
    %c27 = arith.constant 27 : index
    %c0_15 = arith.constant 0 : index
    %15 = vector.load %arg16[%c27, %c0_15] : memref<32x8xf32, #tpu.memory_space<vmem>>, vector<5x8xf32>
    tpu.vector_store %arg16[%c27, %c0_15], %14 {strides = array<i32>} : memref<32x8xf32, #tpu.memory_space<vmem>>, vector<5x8xf32>,
    %c0_16 = arith.constant 0 : index
    %c0_17 = arith.constant 0 : index
    %c0_18 = arith.constant 0 : index
    %16 = vector.load %arg1[%c0_16, %c0_17, %c0_18] : memref<2x16x4xf32, #tpu.memory_space<vmem>>, vector<1x16x4xf32>
    %17 = vector.shape_cast %16 : vector<1x16x4xf32> to vector<16x4xf32>
    %c3 = arith.constant 3 : index
    %c0_19 = arith.constant 0 : index
    %18 = vector.load %arg15[%c3, %c0_19] : memref<48x4xf32, #tpu.memory_space<vmem>>, vector<16x4xf32>
    tpu.vector_store %arg15[%c3, %c0_19], %17 {strides = array<i32>} : memref<48x4xf32, #tpu.memory_space<vmem>>, vector<16x4xf32>,
    %c1 = arith.constant 1 : index
    %c0_20 = arith.constant 0 : index
    %c0_21 = arith.constant 0 : index
    %19 = vector.load %arg1[%c1, %c0_20, %c0_21] : memref<2x16x4xf32, #tpu.memory_space<vmem>>, vector<1x16x4xf32>
    %20 = vector.shape_cast %19 : vector<1x16x4xf32> to vector<16x4xf32>
    %c27_22 = arith.constant 27 : index
    %c0_23 = arith.constant 0 : index
    %21 = vector.load %arg15[%c27_22, %c0_23] : memref<48x4xf32, #tpu.memory_space<vmem>>, vector<16x4xf32>
    tpu.vector_store %arg15[%c27_22, %c0_23], %20 {strides = array<i32>} : memref<48x4xf32, #tpu.memory_space<vmem>>, vector<16x4xf32>,
    %cst_24 = arith.constant 0.000000e+00 : f32
    %22 = vector.broadcast %cst_24 : f32 to vector<21x8xf32>
    %cst_25 = arith.constant 0.000000e+00 : f32
    %23 = vector.broadcast %cst_25 : f32 to vector<21x8xf32>
    %c0_26 = arith.constant 0 : index
    %c0_27 = arith.constant 0 : index
    %c0_28 = arith.constant 0 : index
    %24 = vector.load %arg2[%c0_26, %c0_27, %c0_28] : memref<7x4x8xbf16, #tpu.memory_space<vmem>>, vector<1x4x8xbf16>
    %25 = vector.shape_cast %24 : vector<1x4x8xbf16> to vector<4x8xbf16>
    %c0_29 = arith.constant 0 : index
    %c0_30 = arith.constant 0 : index
    %26 = tpu.strided_load %arg15[%c0_29, %c0_30] {strides = array<i32: 2, 1>} : memref<48x4xf32, #tpu.memory_space<vmem>>, vector<21x4xf32>
    %27 = arith.truncf %26 : vector<21x4xf32> to vector<21x4xbf16>
    %c1_31 = arith.constant 1 : index
    %c0_32 = arith.constant 0 : index
    %28 = tpu.strided_load %arg15[%c1_31, %c0_32] {strides = array<i32: 2, 1>} : memref<48x4xf32, #tpu.memory_space<vmem>>, vector<21x4xf32>
    %29 = arith.truncf %28 : vector<21x4xf32> to vector<21x4xbf16>
    %cst_33 = arith.constant dense<0.000000e+00> : vector<21x8xf32>
    %30 = tpu.matmul %27, %25, %cst_33 {dimension_numbers = #tpu.dot_dimension_numbers<[1], [0], [0], [1], [0, 0, 1, 1], [], []>} : vector<21x4xbf16>, vector<4x8xbf16>, vector<21x8xf32> -> vector<21x8xf32>
    %31 = arith.addf %22, %30 : vector<21x8xf32>
    %cst_34 = arith.constant dense<0.000000e+00> : vector<21x8xf32>
    %32 = tpu.matmul %29, %25, %cst_34 {dimension_numbers = #tpu.dot_dimension_numbers<[1], [0], [0], [1], [0, 0, 1, 1], [], []>} : vector<21x4xbf16>, vector<4x8xbf16>, vector<21x8xf32> -> vector<21x8xf32>
    %33 = arith.addf %23, %32 : vector<21x8xf32>
    %c1_35 = arith.constant 1 : index
    %c0_36 = arith.constant 0 : index
    %c0_37 = arith.constant 0 : index
    %34 = vector.load %arg2[%c1_35, %c0_36, %c0_37] : memref<7x4x8xbf16, #tpu.memory_space<vmem>>, vector<1x4x8xbf16>
    %35 = vector.shape_cast %34 : vector<1x4x8xbf16> to vector<4x8xbf16>
    %c1_38 = arith.constant 1 : index
    %c0_39 = arith.constant 0 : index
    %36 = tpu.strided_load %arg15[%c1_38, %c0_39] {strides = array<i32: 2, 1>} : memref<48x4xf32, #tpu.memory_space<vmem>>, vector<21x4xf32>
    %37 = arith.truncf %36 : vector<21x4xf32> to vector<21x4xbf16>
    %c2 = arith.constant 2 : index
    %c0_40 = arith.constant 0 : index
    %38 = tpu.strided_load %arg15[%c2, %c0_40] {strides = array<i32: 2, 1>} : memref<48x4xf32, #tpu.memory_space<vmem>>, vector<21x4xf32>
    %39 = arith.truncf %38 : vector<21x4xf32> to vector<21x4xbf16>
    %cst_41 = arith.constant dense<0.000000e+00> : vector<21x8xf32>
    %40 = tpu.matmul %37, %35, %cst_41 {dimension_numbers = #tpu.dot_dimension_numbers<[1], [0], [0], [1], [0, 0, 1, 1], [], []>} : vector<21x4xbf16>, vector<4x8xbf16>, vector<21x8xf32> -> vector<21x8xf32>
    %41 = arith.addf %31, %40 : vector<21x8xf32>
    %cst_42 = arith.constant dense<0.000000e+00> : vector<21x8xf32>
    %42 = tpu.matmul %39, %35, %cst_42 {dimension_numbers = #tpu.dot_dimension_numbers<[1], [0], [0], [1], [0, 0, 1, 1], [], []>} : vector<21x4xbf16>, vector<4x8xbf16>, vector<21x8xf32> -> vector<21x8xf32>
    %43 = arith.addf %33, %42 : vector<21x8xf32>
    %c2_43 = arith.constant 2 : index
    %c0_44 = arith.constant 0 : index
    %c0_45 = arith.constant 0 : index
    %44 = vector.load %arg2[%c2_43, %c0_44, %c0_45] : memref<7x4x8xbf16, #tpu.memory_space<vmem>>, vector<1x4x8xbf16>
    %45 = vector.shape_cast %44 : vector<1x4x8xbf16> to vector<4x8xbf16>
    %c2_46 = arith.constant 2 : index
    %c0_47 = arith.constant 0 : index
    %46 = tpu.strided_load %arg15[%c2_46, %c0_47] {strides = array<i32: 2, 1>} : memref<48x4xf32, #tpu.memory_space<vmem>>, vector<21x4xf32>
    %47 = arith.truncf %46 : vector<21x4xf32> to vector<21x4xbf16>
    %c3_48 = arith.constant 3 : index
    %c0_49 = arith.constant 0 : index
    %48 = tpu.strided_load %arg15[%c3_48, %c0_49] {strides = array<i32: 2, 1>} : memref<48x4xf32, #tpu.memory_space<vmem>>, vector<21x4xf32>
    %49 = arith.truncf %48 : vector<21x4xf32> to vector<21x4xbf16>
    %cst_50 = arith.constant dense<0.000000e+00> : vector<21x8xf32>
    %50 = tpu.matmul %47, %45, %cst_50 {dimension_numbers = #tpu.dot_dimension_numbers<[1], [0], [0], [1], [0, 0, 1, 1], [], []>} : vector<21x4xbf16>, vector<4x8xbf16>, vector<21x8xf32> -> vector<21x8xf32>
    %51 = arith.addf %41, %50 : vector<21x8xf32>
    %cst_51 = arith.constant dense<0.000000e+00> : vector<21x8xf32>
    %52 = tpu.matmul %49, %45, %cst_51 {dimension_numbers = #tpu.dot_dimension_numbers<[1], [0], [0], [1], [0, 0, 1, 1], [], []>} : vector<21x4xbf16>, vector<4x8xbf16>, vector<21x8xf32> -> vector<21x8xf32>
    %53 = arith.addf %43, %52 : vector<21x8xf32>
    %c3_52 = arith.constant 3 : index
    %c0_53 = arith.constant 0 : index
    %c0_54 = arith.constant 0 : index
    %54 = vector.load %arg2[%c3_52, %c0_53, %c0_54] : memref<7x4x8xbf16, #tpu.memory_space<vmem>>, vector<1x4x8xbf16>
    %55 = vector.shape_cast %54 : vector<1x4x8xbf16> to vector<4x8xbf16>
    %c3_55 = arith.constant 3 : index
    %c0_56 = arith.constant 0 : index
    %56 = tpu.strided_load %arg15[%c3_55, %c0_56] {strides = array<i32: 2, 1>} : memref<48x4xf32, #tpu.memory_space<vmem>>, vector<21x4xf32>
    %57 = arith.truncf %56 : vector<21x4xf32> to vector<21x4xbf16>
    %c4 = arith.constant 4 : index
    %c0_57 = arith.constant 0 : index
    %58 = tpu.strided_load %arg15[%c4, %c0_57] {strides = array<i32: 2, 1>} : memref<48x4xf32, #tpu.memory_space<vmem>>, vector<21x4xf32>
    %59 = arith.truncf %58 : vector<21x4xf32> to vector<21x4xbf16>
    %cst_58 = arith.constant dense<0.000000e+00> : vector<21x8xf32>
    %60 = tpu.matmul %57, %55, %cst_58 {dimension_numbers = #tpu.dot_dimension_numbers<[1], [0], [0], [1], [0, 0, 1, 1], [], []>} : vector<21x4xbf16>, vector<4x8xbf16>, vector<21x8xf32> -> vector<21x8xf32>
    %61 = arith.addf %51, %60 : vector<21x8xf32>
    %cst_59 = arith.constant dense<0.000000e+00> : vector<21x8xf32>
    %62 = tpu.matmul %59, %55, %cst_59 {dimension_numbers = #tpu.dot_dimension_numbers<[1], [0], [0], [1], [0, 0, 1, 1], [], []>} : vector<21x4xbf16>, vector<4x8xbf16>, vector<21x8xf32> -> vector<21x8xf32>
    %63 = arith.addf %53, %62 : vector<21x8xf32>
    %c4_60 = arith.constant 4 : index
    %c0_61 = arith.constant 0 : index
    %c0_62 = arith.constant 0 : index
    %64 = vector.load %arg2[%c4_60, %c0_61, %c0_62] : memref<7x4x8xbf16, #tpu.memory_space<vmem>>, vector<1x4x8xbf16>
    %65 = vector.shape_cast %64 : vector<1x4x8xbf16> to vector<4x8xbf16>
    %c4_63 = arith.constant 4 : index
    %c0_64 = arith.constant 0 : index
    %66 = tpu.strided_load %arg15[%c4_63, %c0_64] {strides = array<i32: 2, 1>} : memref<48x4xf32, #tpu.memory_space<vmem>>, vector<21x4xf32>
    %67 = arith.truncf %66 : vector<21x4xf32> to vector<21x4xbf16>
    %c5 = arith.constant 5 : index
    %c0_65 = arith.constant 0 : index
    %68 = tpu.strided_load %arg15[%c5, %c0_65] {strides = array<i32: 2, 1>} : memref<48x4xf32, #tpu.memory_space<vmem>>, vector<21x4xf32>
    %69 = arith.truncf %68 : vector<21x4xf32> to vector<21x4xbf16>
    %cst_66 = arith.constant dense<0.000000e+00> : vector<21x8xf32>
    %70 = tpu.matmul %67, %65, %cst_66 {dimension_numbers = #tpu.dot_dimension_numbers<[1], [0], [0], [1], [0, 0, 1, 1], [], []>} : vector<21x4xbf16>, vector<4x8xbf16>, vector<21x8xf32> -> vector<21x8xf32>
    %71 = arith.addf %61, %70 : vector<21x8xf32>
    %cst_67 = arith.constant dense<0.000000e+00> : vector<21x8xf32>
    %72 = tpu.matmul %69, %65, %cst_67 {dimension_numbers = #tpu.dot_dimension_numbers<[1], [0], [0], [1], [0, 0, 1, 1], [], []>} : vector<21x4xbf16>, vector<4x8xbf16>, vector<21x8xf32> -> vector<21x8xf32>
    %73 = arith.addf %63, %72 : vector<21x8xf32>
    %c5_68 = arith.constant 5 : index
    %c0_69 = arith.constant 0 : index
    %c0_70 = arith.constant 0 : index
    %74 = vector.load %arg2[%c5_68, %c0_69, %c0_70] : memref<7x4x8xbf16, #tpu.memory_space<vmem>>, vector<1x4x8xbf16>
    %75 = vector.shape_cast %74 : vector<1x4x8xbf16> to vector<4x8xbf16>
    %c5_71 = arith.constant 5 : index
    %c0_72 = arith.constant 0 : index
    %76 = tpu.strided_load %arg15[%c5_71, %c0_72] {strides = array<i32: 2, 1>} : memref<48x4xf32, #tpu.memory_space<vmem>>, vector<21x4xf32>
    %77 = arith.truncf %76 : vector<21x4xf32> to vector<21x4xbf16>
    %c6 = arith.constant 6 : index
    %c0_73 = arith.constant 0 : index
    %78 = tpu.strided_load %arg15[%c6, %c0_73] {strides = array<i32: 2, 1>} : memref<48x4xf32, #tpu.memory_space<vmem>>, vector<21x4xf32>
    %79 = arith.truncf %78 : vector<21x4xf32> to vector<21x4xbf16>
    %cst_74 = arith.constant dense<0.000000e+00> : vector<21x8xf32>
    %80 = tpu.matmul %77, %75, %cst_74 {dimension_numbers = #tpu.dot_dimension_numbers<[1], [0], [0], [1], [0, 0, 1, 1], [], []>} : vector<21x4xbf16>, vector<4x8xbf16>, vector<21x8xf32> -> vector<21x8xf32>
    %81 = arith.addf %71, %80 : vector<21x8xf32>
    %cst_75 = arith.constant dense<0.000000e+00> : vector<21x8xf32>
    %82 = tpu.matmul %79, %75, %cst_75 {dimension_numbers = #tpu.dot_dimension_numbers<[1], [0], [0], [1], [0, 0, 1, 1], [], []>} : vector<21x4xbf16>, vector<4x8xbf16>, vector<21x8xf32> -> vector<21x8xf32>
    %83 = arith.addf %73, %82 : vector<21x8xf32>
    %c6_76 = arith.constant 6 : index
    %c0_77 = arith.constant 0 : index
    %c0_78 = arith.constant 0 : index
    %84 = vector.load %arg2[%c6_76, %c0_77, %c0_78] : memref<7x4x8xbf16, #tpu.memory_space<vmem>>, vector<1x4x8xbf16>
    %85 = vector.shape_cast %84 : vector<1x4x8xbf16> to vector<4x8xbf16>
    %c6_79 = arith.constant 6 : index
    %c0_80 = arith.constant 0 : index
    %86 = tpu.strided_load %arg15[%c6_79, %c0_80] {strides = array<i32: 2, 1>} : memref<48x4xf32, #tpu.memory_space<vmem>>, vector<21x4xf32>
    %87 = arith.truncf %86 : vector<21x4xf32> to vector<21x4xbf16>
    %c7 = arith.constant 7 : index
    %c0_81 = arith.constant 0 : index
    %88 = tpu.strided_load %arg15[%c7, %c0_81] {strides = array<i32: 2, 1>} : memref<48x4xf32, #tpu.memory_space<vmem>>, vector<21x4xf32>
    %89 = arith.truncf %88 : vector<21x4xf32> to vector<21x4xbf16>
    %cst_82 = arith.constant dense<0.000000e+00> : vector<21x8xf32>
    %90 = tpu.matmul %87, %85, %cst_82 {dimension_numbers = #tpu.dot_dimension_numbers<[1], [0], [0], [1], [0, 0, 1, 1], [], []>} : vector<21x4xbf16>, vector<4x8xbf16>, vector<21x8xf32> -> vector<21x8xf32>
    %91 = arith.addf %81, %90 : vector<21x8xf32>
    %cst_83 = arith.constant dense<0.000000e+00> : vector<21x8xf32>
    %92 = tpu.matmul %89, %85, %cst_83 {dimension_numbers = #tpu.dot_dimension_numbers<[1], [0], [0], [1], [0, 0, 1, 1], [], []>} : vector<21x4xbf16>, vector<4x8xbf16>, vector<21x8xf32> -> vector<21x8xf32>
    %93 = arith.addf %83, %92 : vector<21x8xf32>
    %c0_84 = arith.constant 0 : index
    %c0_85 = arith.constant 0 : index
    %94 = vector.load %arg3[%c0_84, %c0_85] : memref<3x8xf32, #tpu.memory_space<vmem>>, vector<3x8xf32>
    %95 = arith.maximumf %91, %93 : vector<21x8xf32>
    %96 = vector.extract_strided_slice %94 {offsets = [0, 0], sizes = [1, 8], strides = [1, 1]} : vector<3x8xf32> to vector<1x8xf32>
    %97 = vector.broadcast %96 : vector<1x8xf32> to vector<21x8xf32>
    %98 = arith.addf %95, %97 : vector<21x8xf32>
    %cst_86 = arith.constant 0.000000e+00 : f32
    %99 = vector.broadcast %cst_86 : f32 to vector<21x8xf32>
    %100 = arith.cmpf ogt, %98, %99 : vector<21x8xf32>
    %cst_87 = arith.constant 0.000000e+00 : f32
    %101 = vector.broadcast %cst_87 : f32 to vector<21x8xf32>
    %102 = arith.minimumf %98, %101 : vector<21x8xf32>
    %103 = math.exp %102 : vector<21x8xf32>
    %cst_88 = arith.constant 1.000000e+00 : f32
    %104 = vector.broadcast %cst_88 : f32 to vector<21x8xf32>
    %105 = arith.subf %103, %104 : vector<21x8xf32>
    %106 = arith.select %100, %98, %105 : vector<21x8xi1>, vector<21x8xf32>
    %107 = vector.extract_strided_slice %94 {offsets = [1, 0], sizes = [1, 8], strides = [1, 1]} : vector<3x8xf32> to vector<1x8xf32>
    %108 = vector.broadcast %107 : vector<1x8xf32> to vector<21x8xf32>
    %109 = arith.mulf %106, %108 : vector<21x8xf32>
    %110 = vector.extract_strided_slice %94 {offsets = [2, 0], sizes = [1, 8], strides = [1, 1]} : vector<3x8xf32> to vector<1x8xf32>
    %111 = vector.broadcast %110 : vector<1x8xf32> to vector<21x8xf32>
    %112 = arith.addf %109, %111 : vector<21x8xf32>
    %113 = vector.extract_strided_slice %112 {offsets = [0, 0], sizes = [8, 8], strides = [1, 1]} : vector<21x8xf32> to vector<8x8xf32>
    %c3_89 = arith.constant 3 : index
    %c0_90 = arith.constant 0 : index
    %114 = vector.load %arg16[%c3_89, %c0_90] : memref<32x8xf32, #tpu.memory_space<vmem>>, vector<8x8xf32>
    tpu.vector_store %arg16[%c3_89, %c0_90], %113 {strides = array<i32>} : memref<32x8xf32, #tpu.memory_space<vmem>>, vector<8x8xf32>,
    %115 = vector.extract_strided_slice %112 {offsets = [12, 0], sizes = [8, 8], strides = [1, 1]} : vector<21x8xf32> to vector<8x8xf32>
    %c19_91 = arith.constant 19 : index
    %c0_92 = arith.constant 0 : index
    %116 = vector.load %arg16[%c19_91, %c0_92] : memref<32x8xf32, #tpu.memory_space<vmem>>, vector<8x8xf32>
    tpu.vector_store %arg16[%c19_91, %c0_92], %115 {strides = array<i32>} : memref<32x8xf32, #tpu.memory_space<vmem>>, vector<8x8xf32>,
    %cst_93 = arith.constant 0.000000e+00 : f32
    %117 = vector.broadcast %cst_93 : f32 to vector<13x16xf32>
    %cst_94 = arith.constant 0.000000e+00 : f32
    %118 = vector.broadcast %cst_94 : f32 to vector<13x16xf32>
    %c0_95 = arith.constant 0 : index
    %c0_96 = arith.constant 0 : index
    %c0_97 = arith.constant 0 : index
    %119 = vector.load %arg4[%c0_95, %c0_96, %c0_97] : memref<7x8x16xbf16, #tpu.memory_space<vmem>>, vector<1x8x16xbf16>
    %120 = vector.shape_cast %119 : vector<1x8x16xbf16> to vector<8x16xbf16>
    %c0_98 = arith.constant 0 : index
    %c0_99 = arith.constant 0 : index
    %121 = tpu.strided_load %arg16[%c0_98, %c0_99] {strides = array<i32: 2, 1>} : memref<32x8xf32, #tpu.memory_space<vmem>>, vector<13x8xf32>
    %122 = arith.truncf %121 : vector<13x8xf32> to vector<13x8xbf16>
    %c1_100 = arith.constant 1 : index
    %c0_101 = arith.constant 0 : index
    %123 = tpu.strided_load %arg16[%c1_100, %c0_101] {strides = array<i32: 2, 1>} : memref<32x8xf32, #tpu.memory_space<vmem>>, vector<13x8xf32>
    %124 = arith.truncf %123 : vector<13x8xf32> to vector<13x8xbf16>
    %cst_102 = arith.constant dense<0.000000e+00> : vector<13x16xf32>
    %125 = tpu.matmul %122, %120, %cst_102 {dimension_numbers = #tpu.dot_dimension_numbers<[1], [0], [0], [1], [0, 0, 1, 1], [], []>} : vector<13x8xbf16>, vector<8x16xbf16>, vector<13x16xf32> -> vector<13x16xf32>
    %126 = arith.addf %117, %125 : vector<13x16xf32>
    %cst_103 = arith.constant dense<0.000000e+00> : vector<13x16xf32>
    %127 = tpu.matmul %124, %120, %cst_103 {dimension_numbers = #tpu.dot_dimension_numbers<[1], [0], [0], [1], [0, 0, 1, 1], [], []>} : vector<13x8xbf16>, vector<8x16xbf16>, vector<13x16xf32> -> vector<13x16xf32>
    %128 = arith.addf %118, %127 : vector<13x16xf32>
    %c1_104 = arith.constant 1 : index
    %c0_105 = arith.constant 0 : index
    %c0_106 = arith.constant 0 : index
    %129 = vector.load %arg4[%c1_104, %c0_105, %c0_106] : memref<7x8x16xbf16, #tpu.memory_space<vmem>>, vector<1x8x16xbf16>
    %130 = vector.shape_cast %129 : vector<1x8x16xbf16> to vector<8x16xbf16>
    %c1_107 = arith.constant 1 : index
    %c0_108 = arith.constant 0 : index
    %131 = tpu.strided_load %arg16[%c1_107, %c0_108] {strides = array<i32: 2, 1>} : memref<32x8xf32, #tpu.memory_space<vmem>>, vector<13x8xf32>
    %132 = arith.truncf %131 : vector<13x8xf32> to vector<13x8xbf16>
    %c2_109 = arith.constant 2 : index
    %c0_110 = arith.constant 0 : index
    %133 = tpu.strided_load %arg16[%c2_109, %c0_110] {strides = array<i32: 2, 1>} : memref<32x8xf32, #tpu.memory_space<vmem>>, vector<13x8xf32>
    %134 = arith.truncf %133 : vector<13x8xf32> to vector<13x8xbf16>
    %cst_111 = arith.constant dense<0.000000e+00> : vector<13x16xf32>
    %135 = tpu.matmul %132, %130, %cst_111 {dimension_numbers = #tpu.dot_dimension_numbers<[1], [0], [0], [1], [0, 0, 1, 1], [], []>} : vector<13x8xbf16>, vector<8x16xbf16>, vector<13x16xf32> -> vector<13x16xf32>
    %136 = arith.addf %126, %135 : vector<13x16xf32>
    %cst_112 = arith.constant dense<0.000000e+00> : vector<13x16xf32>
    %137 = tpu.matmul %134, %130, %cst_112 {dimension_numbers = #tpu.dot_dimension_numbers<[1], [0], [0], [1], [0, 0, 1, 1], [], []>} : vector<13x8xbf16>, vector<8x16xbf16>, vector<13x16xf32> -> vector<13x16xf32>
    %138 = arith.addf %128, %137 : vector<13x16xf32>
    %c2_113 = arith.constant 2 : index
    %c0_114 = arith.constant 0 : index
    %c0_115 = arith.constant 0 : index
    %139 = vector.load %arg4[%c2_113, %c0_114, %c0_115] : memref<7x8x16xbf16, #tpu.memory_space<vmem>>, vector<1x8x16xbf16>
    %140 = vector.shape_cast %139 : vector<1x8x16xbf16> to vector<8x16xbf16>
    %c2_116 = arith.constant 2 : index
    %c0_117 = arith.constant 0 : index
    %141 = tpu.strided_load %arg16[%c2_116, %c0_117] {strides = array<i32: 2, 1>} : memref<32x8xf32, #tpu.memory_space<vmem>>, vector<13x8xf32>
    %142 = arith.truncf %141 : vector<13x8xf32> to vector<13x8xbf16>
    %c3_118 = arith.constant 3 : index
    %c0_119 = arith.constant 0 : index
    %143 = tpu.strided_load %arg16[%c3_118, %c0_119] {strides = array<i32: 2, 1>} : memref<32x8xf32, #tpu.memory_space<vmem>>, vector<13x8xf32>
    %144 = arith.truncf %143 : vector<13x8xf32> to vector<13x8xbf16>
    %cst_120 = arith.constant dense<0.000000e+00> : vector<13x16xf32>
    %145 = tpu.matmul %142, %140, %cst_120 {dimension_numbers = #tpu.dot_dimension_numbers<[1], [0], [0], [1], [0, 0, 1, 1], [], []>} : vector<13x8xbf16>, vector<8x16xbf16>, vector<13x16xf32> -> vector<13x16xf32>
    %146 = arith.addf %136, %145 : vector<13x16xf32>
    %cst_121 = arith.constant dense<0.000000e+00> : vector<13x16xf32>
    %147 = tpu.matmul %144, %140, %cst_121 {dimension_numbers = #tpu.dot_dimension_numbers<[1], [0], [0], [1], [0, 0, 1, 1], [], []>} : vector<13x8xbf16>, vector<8x16xbf16>, vector<13x16xf32> -> vector<13x16xf32>
    %148 = arith.addf %138, %147 : vector<13x16xf32>
    %c3_122 = arith.constant 3 : index
    %c0_123 = arith.constant 0 : index
    %c0_124 = arith.constant 0 : index
    %149 = vector.load %arg4[%c3_122, %c0_123, %c0_124] : memref<7x8x16xbf16, #tpu.memory_space<vmem>>, vector<1x8x16xbf16>
    %150 = vector.shape_cast %149 : vector<1x8x16xbf16> to vector<8x16xbf16>
    %c3_125 = arith.constant 3 : index
    %c0_126 = arith.constant 0 : index
    %151 = tpu.strided_load %arg16[%c3_125, %c0_126] {strides = array<i32: 2, 1>} : memref<32x8xf32, #tpu.memory_space<vmem>>, vector<13x8xf32>
    %152 = arith.truncf %151 : vector<13x8xf32> to vector<13x8xbf16>
    %c4_127 = arith.constant 4 : index
    %c0_128 = arith.constant 0 : index
    %153 = tpu.strided_load %arg16[%c4_127, %c0_128] {strides = array<i32: 2, 1>} : memref<32x8xf32, #tpu.memory_space<vmem>>, vector<13x8xf32>
    %154 = arith.truncf %153 : vector<13x8xf32> to vector<13x8xbf16>
    %cst_129 = arith.constant dense<0.000000e+00> : vector<13x16xf32>
    %155 = tpu.matmul %152, %150, %cst_129 {dimension_numbers = #tpu.dot_dimension_numbers<[1], [0], [0], [1], [0, 0, 1, 1], [], []>} : vector<13x8xbf16>, vector<8x16xbf16>, vector<13x16xf32> -> vector<13x16xf32>
    %156 = arith.addf %146, %155 : vector<13x16xf32>
    %cst_130 = arith.constant dense<0.000000e+00> : vector<13x16xf32>
    %157 = tpu.matmul %154, %150, %cst_130 {dimension_numbers = #tpu.dot_dimension_numbers<[1], [0], [0], [1], [0, 0, 1, 1], [], []>} : vector<13x8xbf16>, vector<8x16xbf16>, vector<13x16xf32> -> vector<13x16xf32>
    %158 = arith.addf %148, %157 : vector<13x16xf32>
    %c4_131 = arith.constant 4 : index
    %c0_132 = arith.constant 0 : index
    %c0_133 = arith.constant 0 : index
    %159 = vector.load %arg4[%c4_131, %c0_132, %c0_133] : memref<7x8x16xbf16, #tpu.memory_space<vmem>>, vector<1x8x16xbf16>
    %160 = vector.shape_cast %159 : vector<1x8x16xbf16> to vector<8x16xbf16>
    %c4_134 = arith.constant 4 : index
    %c0_135 = arith.constant 0 : index
    %161 = tpu.strided_load %arg16[%c4_134, %c0_135] {strides = array<i32: 2, 1>} : memref<32x8xf32, #tpu.memory_space<vmem>>, vector<13x8xf32>
    %162 = arith.truncf %161 : vector<13x8xf32> to vector<13x8xbf16>
    %c5_136 = arith.constant 5 : index
    %c0_137 = arith.constant 0 : index
    %163 = tpu.strided_load %arg16[%c5_136, %c0_137] {strides = array<i32: 2, 1>} : memref<32x8xf32, #tpu.memory_space<vmem>>, vector<13x8xf32>
    %164 = arith.truncf %163 : vector<13x8xf32> to vector<13x8xbf16>
    %cst_138 = arith.constant dense<0.000000e+00> : vector<13x16xf32>
    %165 = tpu.matmul %162, %160, %cst_138 {dimension_numbers = #tpu.dot_dimension_numbers<[1], [0], [0], [1], [0, 0, 1, 1], [], []>} : vector<13x8xbf16>, vector<8x16xbf16>, vector<13x16xf32> -> vector<13x16xf32>
    %166 = arith.addf %156, %165 : vector<13x16xf32>
    %cst_139 = arith.constant dense<0.000000e+00> : vector<13x16xf32>
    %167 = tpu.matmul %164, %160, %cst_139 {dimension_numbers = #tpu.dot_dimension_numbers<[1], [0], [0], [1], [0, 0, 1, 1], [], []>} : vector<13x8xbf16>, vector<8x16xbf16>, vector<13x16xf32> -> vector<13x16xf32>
    %168 = arith.addf %158, %167 : vector<13x16xf32>
    %c5_140 = arith.constant 5 : index
    %c0_141 = arith.constant 0 : index
    %c0_142 = arith.constant 0 : index
    %169 = vector.load %arg4[%c5_140, %c0_141, %c0_142] : memref<7x8x16xbf16, #tpu.memory_space<vmem>>, vector<1x8x16xbf16>
    %170 = vector.shape_cast %169 : vector<1x8x16xbf16> to vector<8x16xbf16>
    %c5_143 = arith.constant 5 : index
    %c0_144 = arith.constant 0 : index
    %171 = tpu.strided_load %arg16[%c5_143, %c0_144] {strides = array<i32: 2, 1>} : memref<32x8xf32, #tpu.memory_space<vmem>>, vector<13x8xf32>
    %172 = arith.truncf %171 : vector<13x8xf32> to vector<13x8xbf16>
    %c6_145 = arith.constant 6 : index
    %c0_146 = arith.constant 0 : index
    %173 = tpu.strided_load %arg16[%c6_145, %c0_146] {strides = array<i32: 2, 1>} : memref<32x8xf32, #tpu.memory_space<vmem>>, vector<13x8xf32>
    %174 = arith.truncf %173 : vector<13x8xf32> to vector<13x8xbf16>
    %cst_147 = arith.constant dense<0.000000e+00> : vector<13x16xf32>
    %175 = tpu.matmul %172, %170, %cst_147 {dimension_numbers = #tpu.dot_dimension_numbers<[1], [0], [0], [1], [0, 0, 1, 1], [], []>} : vector<13x8xbf16>, vector<8x16xbf16>, vector<13x16xf32> -> vector<13x16xf32>
    %176 = arith.addf %166, %175 : vector<13x16xf32>
    %cst_148 = arith.constant dense<0.000000e+00> : vector<13x16xf32>
    %177 = tpu.matmul %174, %170, %cst_148 {dimension_numbers = #tpu.dot_dimension_numbers<[1], [0], [0], [1], [0, 0, 1, 1], [], []>} : vector<13x8xbf16>, vector<8x16xbf16>, vector<13x16xf32> -> vector<13x16xf32>
    %178 = arith.addf %168, %177 : vector<13x16xf32>
    %c6_149 = arith.constant 6 : index
    %c0_150 = arith.constant 0 : index
    %c0_151 = arith.constant 0 : index
    %179 = vector.load %arg4[%c6_149, %c0_150, %c0_151] : memref<7x8x16xbf16, #tpu.memory_space<vmem>>, vector<1x8x16xbf16>
    %180 = vector.shape_cast %179 : vector<1x8x16xbf16> to vector<8x16xbf16>
    %c6_152 = arith.constant 6 : index
    %c0_153 = arith.constant 0 : index
    %181 = tpu.strided_load %arg16[%c6_152, %c0_153] {strides = array<i32: 2, 1>} : memref<32x8xf32, #tpu.memory_space<vmem>>, vector<13x8xf32>
    %182 = arith.truncf %181 : vector<13x8xf32> to vector<13x8xbf16>
    %c7_154 = arith.constant 7 : index
    %c0_155 = arith.constant 0 : index
    %183 = tpu.strided_load %arg16[%c7_154, %c0_155] {strides = array<i32: 2, 1>} : memref<32x8xf32, #tpu.memory_space<vmem>>, vector<13x8xf32>
    %184 = arith.truncf %183 : vector<13x8xf32> to vector<13x8xbf16>
    %cst_156 = arith.constant dense<0.000000e+00> : vector<13x16xf32>
    %185 = tpu.matmul %182, %180, %cst_156 {dimension_numbers = #tpu.dot_dimension_numbers<[1], [0], [0], [1], [0, 0, 1, 1], [], []>} : vector<13x8xbf16>, vector<8x16xbf16>, vector<13x16xf32> -> vector<13x16xf32>
    %186 = arith.addf %176, %185 : vector<13x16xf32>
    %cst_157 = arith.constant dense<0.000000e+00> : vector<13x16xf32>
    %187 = tpu.matmul %184, %180, %cst_157 {dimension_numbers = #tpu.dot_dimension_numbers<[1], [0], [0], [1], [0, 0, 1, 1], [], []>} : vector<13x8xbf16>, vector<8x16xbf16>, vector<13x16xf32> -> vector<13x16xf32>
    %188 = arith.addf %178, %187 : vector<13x16xf32>
    %c0_158 = arith.constant 0 : index
    %c0_159 = arith.constant 0 : index
    %189 = vector.load %arg5[%c0_158, %c0_159] : memref<3x16xf32, #tpu.memory_space<vmem>>, vector<3x16xf32>
    %190 = arith.maximumf %186, %188 : vector<13x16xf32>
    %191 = vector.extract_strided_slice %189 {offsets = [0, 0], sizes = [1, 16], strides = [1, 1]} : vector<3x16xf32> to vector<1x16xf32>
    %192 = vector.broadcast %191 : vector<1x16xf32> to vector<13x16xf32>
    %193 = arith.addf %190, %192 : vector<13x16xf32>
    %cst_160 = arith.constant 0.000000e+00 : f32
    %194 = vector.broadcast %cst_160 : f32 to vector<13x16xf32>
    %195 = arith.cmpf ogt, %193, %194 : vector<13x16xf32>
    %cst_161 = arith.constant 0.000000e+00 : f32
    %196 = vector.broadcast %cst_161 : f32 to vector<13x16xf32>
    %197 = arith.minimumf %193, %196 : vector<13x16xf32>
    %198 = math.exp %197 : vector<13x16xf32>
    %cst_162 = arith.constant 1.000000e+00 : f32
    %199 = vector.broadcast %cst_162 : f32 to vector<13x16xf32>
    %200 = arith.subf %198, %199 : vector<13x16xf32>
    %201 = arith.select %195, %193, %200 : vector<13x16xi1>, vector<13x16xf32>
    %202 = vector.extract_strided_slice %189 {offsets = [1, 0], sizes = [1, 16], strides = [1, 1]} : vector<3x16xf32> to vector<1x16xf32>
    %203 = vector.broadcast %202 : vector<1x16xf32> to vector<13x16xf32>
    %204 = arith.mulf %201, %203 : vector<13x16xf32>
    %205 = vector.extract_strided_slice %189 {offsets = [2, 0], sizes = [1, 16], strides = [1, 1]} : vector<3x16xf32> to vector<1x16xf32>
    %206 = vector.broadcast %205 : vector<1x16xf32> to vector<13x16xf32>
    %207 = arith.addf %204, %206 : vector<13x16xf32>
    %208 = vector.extract_strided_slice %207 {offsets = [0, 0], sizes = [4, 16], strides = [1, 1]} : vector<13x16xf32> to vector<4x16xf32>
    %209 = arith.truncf %208 : vector<4x16xf32> to vector<4x16xbf16>
    %c0_163 = arith.constant 0 : index
    %c0_164 = arith.constant 0 : index
    %210 = vector.load %arg17[%c0_163, %c0_164] : memref<8x16xbf16, #tpu.memory_space<vmem>>, vector<4x16xbf16>
    tpu.vector_store %arg17[%c0_163, %c0_164], %209 {strides = array<i32>} : memref<8x16xbf16, #tpu.memory_space<vmem>>, vector<4x16xbf16>,
    %211 = vector.extract_strided_slice %207 {offsets = [8, 0], sizes = [4, 16], strides = [1, 1]} : vector<13x16xf32> to vector<4x16xf32>
    %212 = arith.truncf %211 : vector<4x16xf32> to vector<4x16xbf16>
    %c4_165 = arith.constant 4 : index
    %c0_166 = arith.constant 0 : index
    %213 = vector.load %arg17[%c4_165, %c0_166] : memref<8x16xbf16, #tpu.memory_space<vmem>>, vector<4x16xbf16>
    tpu.vector_store %arg17[%c4_165, %c0_166], %212 {strides = array<i32>} : memref<8x16xbf16, #tpu.memory_space<vmem>>, vector<4x16xbf16>,
    %c0_167 = arith.constant 0 : index
    %c0_168 = arith.constant 0 : index
    %214 = vector.load %arg8[%c0_167, %c0_168] : memref<1x128xf32, #tpu.memory_space<vmem>>, vector<1x128xf32>
    %215 = vector.extract_strided_slice %214 {offsets = [0, 0], sizes = [1, 96], strides = [1, 1]} : vector<1x128xf32> to vector<1x96xf32>
    %216 = vector.extract_strided_slice %214 {offsets = [0, 96], sizes = [1, 32], strides = [1, 1]} : vector<1x128xf32> to vector<1x32xf32>
    %c0_169 = arith.constant 0 : index
    %c0_170 = arith.constant 0 : index
    %217 = vector.load %arg7[%c0_169, %c0_170] : memref<32x96xbf16, #tpu.memory_space<vmem>>, vector<32x96xbf16>
    %c0_171 = arith.constant 0 : index
    %c0_172 = arith.constant 0 : index
    %218 = vector.load %arg17[%c0_171, %c0_172] : memref<8x16xbf16, #tpu.memory_space<vmem>>, vector<8x16xbf16>
    %c0_173 = arith.constant 0 : index
    %c0_174 = arith.constant 0 : index
    %219 = vector.load %arg6[%c0_173, %c0_174] : memref<16x96xbf16, #tpu.memory_space<vmem>>, vector<16x96xbf16>
    %cst_175 = arith.constant dense<0.000000e+00> : vector<8x96xf32>
    %220 = tpu.matmul %218, %219, %cst_175 {dimension_numbers = #tpu.dot_dimension_numbers<[1], [0], [0], [1], [0, 0, 1, 1], [], []>} : vector<8x16xbf16>, vector<16x96xbf16>, vector<8x96xf32> -> vector<8x96xf32>
    %221 = vector.broadcast %215 : vector<1x96xf32> to vector<8x96xf32>
    %222 = arith.addf %220, %221 : vector<8x96xf32>
    %c0_176 = arith.constant 0 : index
    %c0_177 = arith.constant 0 : index
    %223 = vector.load %arg18[%c0_176, %c0_177] : memref<8x96xf32, #tpu.memory_space<vmem>>, vector<8x96xf32>
    tpu.vector_store %arg18[%c0_176, %c0_177], %222 {strides = array<i32>} : memref<8x96xf32, #tpu.memory_space<vmem>>, vector<8x96xf32>,
    %cst_178 = arith.constant 0.000000e+00 : f32
    %224 = vector.broadcast %cst_178 : f32 to vector<2x32xf32>
    %c0_i32 = arith.constant 0 : i32
    %225 = arith.index_cast %c0_i32 : i32 to index
    %c0_179 = arith.constant 0 : index
    %226 = tpu.strided_load %arg18[%225, %c0_179] {strides = array<i32: 4, 1>} : memref<8x96xf32, #tpu.memory_space<vmem>>, vector<2x96xf32>
    %227 = arith.truncf %224 : vector<2x32xf32> to vector<2x32xbf16>
    %cst_180 = arith.constant dense<0.000000e+00> : vector<2x96xf32>
    %228 = tpu.matmul %227, %217, %cst_180 {dimension_numbers = #tpu.dot_dimension_numbers<[1], [0], [0], [1], [0, 0, 1, 1], [], []>} : vector<2x32xbf16>, vector<32x96xbf16>, vector<2x96xf32> -> vector<2x96xf32>
    %229 = arith.addf %226, %228 : vector<2x96xf32>
    %230 = vector.extract_strided_slice %229 {offsets = [0, 0], sizes = [2, 32], strides = [1, 1]} : vector<2x96xf32> to vector<2x32xf32>
    %231 = arith.negf %230 : vector<2x32xf32>
    %232 = math.exp %231 : vector<2x32xf32>
    %cst_181 = arith.constant 1.000000e+00 : f32
    %233 = vector.broadcast %cst_181 : f32 to vector<2x32xf32>
    %234 = arith.addf %233, %232 : vector<2x32xf32>
    %235 = arith.divf %233, %234 : vector<2x32xf32>
    %236 = vector.extract_strided_slice %229 {offsets = [0, 32], sizes = [2, 32], strides = [1, 1]} : vector<2x96xf32> to vector<2x32xf32>
    %237 = arith.negf %236 : vector<2x32xf32>
    %238 = math.exp %237 : vector<2x32xf32>
    %cst_182 = arith.constant 1.000000e+00 : f32
    %239 = vector.broadcast %cst_182 : f32 to vector<2x32xf32>
    %240 = arith.addf %239, %238 : vector<2x32xf32>
    %241 = arith.divf %239, %240 : vector<2x32xf32>
    %242 = vector.extract_strided_slice %226 {offsets = [0, 64], sizes = [2, 32], strides = [1, 1]} : vector<2x96xf32> to vector<2x32xf32>
    %243 = vector.extract_strided_slice %228 {offsets = [0, 64], sizes = [2, 32], strides = [1, 1]} : vector<2x96xf32> to vector<2x32xf32>
    %244 = vector.broadcast %216 : vector<1x32xf32> to vector<2x32xf32>
    %245 = arith.addf %243, %244 : vector<2x32xf32>
    %246 = arith.mulf %235, %245 : vector<2x32xf32>
    %247 = arith.addf %242, %246 : vector<2x32xf32>
    %248 = math.tanh %247 : vector<2x32xf32>
    %cst_183 = arith.constant 1.000000e+00 : f32
    %249 = vector.broadcast %cst_183 : f32 to vector<2x32xf32>
    %250 = arith.subf %249, %241 : vector<2x32xf32>
    %251 = arith.mulf %250, %248 : vector<2x32xf32>
    %252 = arith.mulf %241, %224 : vector<2x32xf32>
    %253 = arith.addf %251, %252 : vector<2x32xf32>
    %254 = arith.truncf %253 : vector<2x32xf32> to vector<2x32xbf16>
    %c2_i32 = arith.constant 2 : i32
    %255 = arith.muli %c0_i32, %c2_i32 : i32
    %256 = arith.index_cast %255 : i32 to index
    %c0_184 = arith.constant 0 : index
    %257 = vector.load %arg19[%256, %c0_184] : memref<8x32xbf16, #tpu.memory_space<vmem>>, vector<2x32xbf16>
    tpu.vector_store %arg19[%256, %c0_184], %254 {strides = array<i32>} : memref<8x32xbf16, #tpu.memory_space<vmem>>, vector<2x32xbf16>,
    %c1_i32 = arith.constant 1 : i32
    %258 = arith.index_cast %c1_i32 : i32 to index
    %c0_185 = arith.constant 0 : index
    %259 = tpu.strided_load %arg18[%258, %c0_185] {strides = array<i32: 4, 1>} : memref<8x96xf32, #tpu.memory_space<vmem>>, vector<2x96xf32>
    %260 = arith.truncf %253 : vector<2x32xf32> to vector<2x32xbf16>
    %cst_186 = arith.constant dense<0.000000e+00> : vector<2x96xf32>
    %261 = tpu.matmul %260, %217, %cst_186 {dimension_numbers = #tpu.dot_dimension_numbers<[1], [0], [0], [1], [0, 0, 1, 1], [], []>} : vector<2x32xbf16>, vector<32x96xbf16>, vector<2x96xf32> -> vector<2x96xf32>
    %262 = arith.addf %259, %261 : vector<2x96xf32>
    %263 = vector.extract_strided_slice %262 {offsets = [0, 0], sizes = [2, 32], strides = [1, 1]} : vector<2x96xf32> to vector<2x32xf32>
    %264 = arith.negf %263 : vector<2x32xf32>
    %265 = math.exp %264 : vector<2x32xf32>
    %cst_187 = arith.constant 1.000000e+00 : f32
    %266 = vector.broadcast %cst_187 : f32 to vector<2x32xf32>
    %267 = arith.addf %266, %265 : vector<2x32xf32>
    %268 = arith.divf %266, %267 : vector<2x32xf32>
    %269 = vector.extract_strided_slice %262 {offsets = [0, 32], sizes = [2, 32], strides = [1, 1]} : vector<2x96xf32> to vector<2x32xf32>
    %270 = arith.negf %269 : vector<2x32xf32>
    %271 = math.exp %270 : vector<2x32xf32>
    %cst_188 = arith.constant 1.000000e+00 : f32
    %272 = vector.broadcast %cst_188 : f32 to vector<2x32xf32>
    %273 = arith.addf %272, %271 : vector<2x32xf32>
    %274 = arith.divf %272, %273 : vector<2x32xf32>
    %275 = vector.extract_strided_slice %259 {offsets = [0, 64], sizes = [2, 32], strides = [1, 1]} : vector<2x96xf32> to vector<2x32xf32>
    %276 = vector.extract_strided_slice %261 {offsets = [0, 64], sizes = [2, 32], strides = [1, 1]} : vector<2x96xf32> to vector<2x32xf32>
    %277 = vector.broadcast %216 : vector<1x32xf32> to vector<2x32xf32>
    %278 = arith.addf %276, %277 : vector<2x32xf32>
    %279 = arith.mulf %268, %278 : vector<2x32xf32>
    %280 = arith.addf %275, %279 : vector<2x32xf32>
    %281 = math.tanh %280 : vector<2x32xf32>
    %cst_189 = arith.constant 1.000000e+00 : f32
    %282 = vector.broadcast %cst_189 : f32 to vector<2x32xf32>
    %283 = arith.subf %282, %274 : vector<2x32xf32>
    %284 = arith.mulf %283, %281 : vector<2x32xf32>
    %285 = arith.mulf %274, %253 : vector<2x32xf32>
    %286 = arith.addf %284, %285 : vector<2x32xf32>
    %287 = arith.truncf %286 : vector<2x32xf32> to vector<2x32xbf16>
    %c2_i32_190 = arith.constant 2 : i32
    %288 = arith.muli %c1_i32, %c2_i32_190 : i32
    %289 = arith.index_cast %288 : i32 to index
    %c0_191 = arith.constant 0 : index
    %290 = vector.load %arg19[%289, %c0_191] : memref<8x32xbf16, #tpu.memory_space<vmem>>, vector<2x32xbf16>
    tpu.vector_store %arg19[%289, %c0_191], %287 {strides = array<i32>} : memref<8x32xbf16, #tpu.memory_space<vmem>>, vector<2x32xbf16>,
    %c2_i32_192 = arith.constant 2 : i32
    %291 = arith.index_cast %c2_i32_192 : i32 to index
    %c0_193 = arith.constant 0 : index
    %292 = tpu.strided_load %arg18[%291, %c0_193] {strides = array<i32: 4, 1>} : memref<8x96xf32, #tpu.memory_space<vmem>>, vector<2x96xf32>
    %293 = arith.truncf %286 : vector<2x32xf32> to vector<2x32xbf16>
    %cst_194 = arith.constant dense<0.000000e+00> : vector<2x96xf32>
    %294 = tpu.matmul %293, %217, %cst_194 {dimension_numbers = #tpu.dot_dimension_numbers<[1], [0], [0], [1], [0, 0, 1, 1], [], []>} : vector<2x32xbf16>, vector<32x96xbf16>, vector<2x96xf32> -> vector<2x96xf32>
    %295 = arith.addf %292, %294 : vector<2x96xf32>
    %296 = vector.extract_strided_slice %295 {offsets = [0, 0], sizes = [2, 32], strides = [1, 1]} : vector<2x96xf32> to vector<2x32xf32>
    %297 = arith.negf %296 : vector<2x32xf32>
    %298 = math.exp %297 : vector<2x32xf32>
    %cst_195 = arith.constant 1.000000e+00 : f32
    %299 = vector.broadcast %cst_195 : f32 to vector<2x32xf32>
    %300 = arith.addf %299, %298 : vector<2x32xf32>
    %301 = arith.divf %299, %300 : vector<2x32xf32>
    %302 = vector.extract_strided_slice %295 {offsets = [0, 32], sizes = [2, 32], strides = [1, 1]} : vector<2x96xf32> to vector<2x32xf32>
    %303 = arith.negf %302 : vector<2x32xf32>
    %304 = math.exp %303 : vector<2x32xf32>
    %cst_196 = arith.constant 1.000000e+00 : f32
    %305 = vector.broadcast %cst_196 : f32 to vector<2x32xf32>
    %306 = arith.addf %305, %304 : vector<2x32xf32>
    %307 = arith.divf %305, %306 : vector<2x32xf32>
    %308 = vector.extract_strided_slice %292 {offsets = [0, 64], sizes = [2, 32], strides = [1, 1]} : vector<2x96xf32> to vector<2x32xf32>
    %309 = vector.extract_strided_slice %294 {offsets = [0, 64], sizes = [2, 32], strides = [1, 1]} : vector<2x96xf32> to vector<2x32xf32>
    %310 = vector.broadcast %216 : vector<1x32xf32> to vector<2x32xf32>
    %311 = arith.addf %309, %310 : vector<2x32xf32>
    %312 = arith.mulf %301, %311 : vector<2x32xf32>
    %313 = arith.addf %308, %312 : vector<2x32xf32>
    %314 = math.tanh %313 : vector<2x32xf32>
    %cst_197 = arith.constant 1.000000e+00 : f32
    %315 = vector.broadcast %cst_197 : f32 to vector<2x32xf32>
    %316 = arith.subf %315, %307 : vector<2x32xf32>
    %317 = arith.mulf %316, %314 : vector<2x32xf32>
    %318 = arith.mulf %307, %286 : vector<2x32xf32>
    %319 = arith.addf %317, %318 : vector<2x32xf32>
    %320 = arith.truncf %319 : vector<2x32xf32> to vector<2x32xbf16>
    %c2_i32_198 = arith.constant 2 : i32
    %321 = arith.muli %c2_i32_192, %c2_i32_198 : i32
    %322 = arith.index_cast %321 : i32 to index
    %c0_199 = arith.constant 0 : index
    %323 = vector.load %arg19[%322, %c0_199] : memref<8x32xbf16, #tpu.memory_space<vmem>>, vector<2x32xbf16>
    tpu.vector_store %arg19[%322, %c0_199], %320 {strides = array<i32>} : memref<8x32xbf16, #tpu.memory_space<vmem>>, vector<2x32xbf16>,
    %c3_i32 = arith.constant 3 : i32
    %324 = arith.index_cast %c3_i32 : i32 to index
    %c0_200 = arith.constant 0 : index
    %325 = tpu.strided_load %arg18[%324, %c0_200] {strides = array<i32: 4, 1>} : memref<8x96xf32, #tpu.memory_space<vmem>>, vector<2x96xf32>
    %326 = arith.truncf %319 : vector<2x32xf32> to vector<2x32xbf16>
    %cst_201 = arith.constant dense<0.000000e+00> : vector<2x96xf32>
    %327 = tpu.matmul %326, %217, %cst_201 {dimension_numbers = #tpu.dot_dimension_numbers<[1], [0], [0], [1], [0, 0, 1, 1], [], []>} : vector<2x32xbf16>, vector<32x96xbf16>, vector<2x96xf32> -> vector<2x96xf32>
    %328 = arith.addf %325, %327 : vector<2x96xf32>
    %329 = vector.extract_strided_slice %328 {offsets = [0, 0], sizes = [2, 32], strides = [1, 1]} : vector<2x96xf32> to vector<2x32xf32>
    %330 = arith.negf %329 : vector<2x32xf32>
    %331 = math.exp %330 : vector<2x32xf32>
    %cst_202 = arith.constant 1.000000e+00 : f32
    %332 = vector.broadcast %cst_202 : f32 to vector<2x32xf32>
    %333 = arith.addf %332, %331 : vector<2x32xf32>
    %334 = arith.divf %332, %333 : vector<2x32xf32>
    %335 = vector.extract_strided_slice %328 {offsets = [0, 32], sizes = [2, 32], strides = [1, 1]} : vector<2x96xf32> to vector<2x32xf32>
    %336 = arith.negf %335 : vector<2x32xf32>
    %337 = math.exp %336 : vector<2x32xf32>
    %cst_203 = arith.constant 1.000000e+00 : f32
    %338 = vector.broadcast %cst_203 : f32 to vector<2x32xf32>
    %339 = arith.addf %338, %337 : vector<2x32xf32>
    %340 = arith.divf %338, %339 : vector<2x32xf32>
    %341 = vector.extract_strided_slice %325 {offsets = [0, 64], sizes = [2, 32], strides = [1, 1]} : vector<2x96xf32> to vector<2x32xf32>
    %342 = vector.extract_strided_slice %327 {offsets = [0, 64], sizes = [2, 32], strides = [1, 1]} : vector<2x96xf32> to vector<2x32xf32>
    %343 = vector.broadcast %216 : vector<1x32xf32> to vector<2x32xf32>
    %344 = arith.addf %342, %343 : vector<2x32xf32>
    %345 = arith.mulf %334, %344 : vector<2x32xf32>
    %346 = arith.addf %341, %345 : vector<2x32xf32>
    %347 = math.tanh %346 : vector<2x32xf32>
    %cst_204 = arith.constant 1.000000e+00 : f32
    %348 = vector.broadcast %cst_204 : f32 to vector<2x32xf32>
    %349 = arith.subf %348, %340 : vector<2x32xf32>
    %350 = arith.mulf %349, %347 : vector<2x32xf32>
    %351 = arith.mulf %340, %319 : vector<2x32xf32>
    %352 = arith.addf %350, %351 : vector<2x32xf32>
    %353 = arith.truncf %352 : vector<2x32xf32> to vector<2x32xbf16>
    %c2_i32_205 = arith.constant 2 : i32
    %354 = arith.muli %c3_i32, %c2_i32_205 : i32
    %355 = arith.index_cast %354 : i32 to index
    %c0_206 = arith.constant 0 : index
    %356 = vector.load %arg19[%355, %c0_206] : memref<8x32xbf16, #tpu.memory_space<vmem>>, vector<2x32xbf16>
    tpu.vector_store %arg19[%355, %c0_206], %353 {strides = array<i32>} : memref<8x32xbf16, #tpu.memory_space<vmem>>, vector<2x32xbf16>,
    %c4_i32 = arith.constant 4 : i32
    %c0_207 = arith.constant 0 : index
    %c0_208 = arith.constant 0 : index
    %357 = vector.load %arg11[%c0_207, %c0_208] : memref<1x128xf32, #tpu.memory_space<vmem>>, vector<1x128xf32>
    %358 = vector.extract_strided_slice %357 {offsets = [0, 0], sizes = [1, 96], strides = [1, 1]} : vector<1x128xf32> to vector<1x96xf32>
    %359 = vector.extract_strided_slice %357 {offsets = [0, 96], sizes = [1, 32], strides = [1, 1]} : vector<1x128xf32> to vector<1x32xf32>
    %c0_209 = arith.constant 0 : index
    %c0_210 = arith.constant 0 : index
    %360 = vector.load %arg10[%c0_209, %c0_210] : memref<32x96xbf16, #tpu.memory_space<vmem>>, vector<32x96xbf16>
    %c0_211 = arith.constant 0 : index
    %c0_212 = arith.constant 0 : index
    %361 = vector.load %arg19[%c0_211, %c0_212] : memref<8x32xbf16, #tpu.memory_space<vmem>>, vector<8x32xbf16>
    %c0_213 = arith.constant 0 : index
    %c0_214 = arith.constant 0 : index
    %362 = vector.load %arg9[%c0_213, %c0_214] : memref<32x96xbf16, #tpu.memory_space<vmem>>, vector<32x96xbf16>
    %cst_215 = arith.constant dense<0.000000e+00> : vector<8x96xf32>
    %363 = tpu.matmul %361, %362, %cst_215 {dimension_numbers = #tpu.dot_dimension_numbers<[1], [0], [0], [1], [0, 0, 1, 1], [], []>} : vector<8x32xbf16>, vector<32x96xbf16>, vector<8x96xf32> -> vector<8x96xf32>
    %364 = vector.broadcast %358 : vector<1x96xf32> to vector<8x96xf32>
    %365 = arith.addf %363, %364 : vector<8x96xf32>
    %c0_216 = arith.constant 0 : index
    %c0_217 = arith.constant 0 : index
    %366 = vector.load %arg18[%c0_216, %c0_217] : memref<8x96xf32, #tpu.memory_space<vmem>>, vector<8x96xf32>
    tpu.vector_store %arg18[%c0_216, %c0_217], %365 {strides = array<i32>} : memref<8x96xf32, #tpu.memory_space<vmem>>, vector<8x96xf32>,
    %cst_218 = arith.constant 0.000000e+00 : f32
    %367 = vector.broadcast %cst_218 : f32 to vector<2x32xf32>
    %c0_i32_219 = arith.constant 0 : i32
    %c2_i32_220 = arith.constant 2 : i32
    %368 = arith.muli %c0_i32_219, %c2_i32_220 : i32
    %369 = arith.index_cast %368 : i32 to index
    %c0_221 = arith.constant 0 : index
    %370 = vector.load %arg18[%369, %c0_221] : memref<8x96xf32, #tpu.memory_space<vmem>>, vector<2x96xf32>
    %371 = arith.truncf %367 : vector<2x32xf32> to vector<2x32xbf16>
    %cst_222 = arith.constant dense<0.000000e+00> : vector<2x96xf32>
    %372 = tpu.matmul %371, %360, %cst_222 {dimension_numbers = #tpu.dot_dimension_numbers<[1], [0], [0], [1], [0, 0, 1, 1], [], []>} : vector<2x32xbf16>, vector<32x96xbf16>, vector<2x96xf32> -> vector<2x96xf32>
    %373 = arith.addf %370, %372 : vector<2x96xf32>
    %374 = vector.extract_strided_slice %373 {offsets = [0, 0], sizes = [2, 32], strides = [1, 1]} : vector<2x96xf32> to vector<2x32xf32>
    %375 = arith.negf %374 : vector<2x32xf32>
    %376 = math.exp %375 : vector<2x32xf32>
    %cst_223 = arith.constant 1.000000e+00 : f32
    %377 = vector.broadcast %cst_223 : f32 to vector<2x32xf32>
    %378 = arith.addf %377, %376 : vector<2x32xf32>
    %379 = arith.divf %377, %378 : vector<2x32xf32>
    %380 = vector.extract_strided_slice %373 {offsets = [0, 32], sizes = [2, 32], strides = [1, 1]} : vector<2x96xf32> to vector<2x32xf32>
    %381 = arith.negf %380 : vector<2x32xf32>
    %382 = math.exp %381 : vector<2x32xf32>
    %cst_224 = arith.constant 1.000000e+00 : f32
    %383 = vector.broadcast %cst_224 : f32 to vector<2x32xf32>
    %384 = arith.addf %383, %382 : vector<2x32xf32>
    %385 = arith.divf %383, %384 : vector<2x32xf32>
    %386 = vector.extract_strided_slice %370 {offsets = [0, 64], sizes = [2, 32], strides = [1, 1]} : vector<2x96xf32> to vector<2x32xf32>
    %387 = vector.extract_strided_slice %372 {offsets = [0, 64], sizes = [2, 32], strides = [1, 1]} : vector<2x96xf32> to vector<2x32xf32>
    %388 = vector.broadcast %359 : vector<1x32xf32> to vector<2x32xf32>
    %389 = arith.addf %387, %388 : vector<2x32xf32>
    %390 = arith.mulf %379, %389 : vector<2x32xf32>
    %391 = arith.addf %386, %390 : vector<2x32xf32>
    %392 = math.tanh %391 : vector<2x32xf32>
    %cst_225 = arith.constant 1.000000e+00 : f32
    %393 = vector.broadcast %cst_225 : f32 to vector<2x32xf32>
    %394 = arith.subf %393, %385 : vector<2x32xf32>
    %395 = arith.mulf %394, %392 : vector<2x32xf32>
    %396 = arith.mulf %385, %367 : vector<2x32xf32>
    %397 = arith.addf %395, %396 : vector<2x32xf32>
    %c1_i32_226 = arith.constant 1 : i32
    %c2_i32_227 = arith.constant 2 : i32
    %398 = arith.muli %c1_i32_226, %c2_i32_227 : i32
    %399 = arith.index_cast %398 : i32 to index
    %c0_228 = arith.constant 0 : index
    %400 = vector.load %arg18[%399, %c0_228] : memref<8x96xf32, #tpu.memory_space<vmem>>, vector<2x96xf32>
    %401 = arith.truncf %397 : vector<2x32xf32> to vector<2x32xbf16>
    %cst_229 = arith.constant dense<0.000000e+00> : vector<2x96xf32>
    %402 = tpu.matmul %401, %360, %cst_229 {dimension_numbers = #tpu.dot_dimension_numbers<[1], [0], [0], [1], [0, 0, 1, 1], [], []>} : vector<2x32xbf16>, vector<32x96xbf16>, vector<2x96xf32> -> vector<2x96xf32>
    %403 = arith.addf %400, %402 : vector<2x96xf32>
    %404 = vector.extract_strided_slice %403 {offsets = [0, 0], sizes = [2, 32], strides = [1, 1]} : vector<2x96xf32> to vector<2x32xf32>
    %405 = arith.negf %404 : vector<2x32xf32>
    %406 = math.exp %405 : vector<2x32xf32>
    %cst_230 = arith.constant 1.000000e+00 : f32
    %407 = vector.broadcast %cst_230 : f32 to vector<2x32xf32>
    %408 = arith.addf %407, %406 : vector<2x32xf32>
    %409 = arith.divf %407, %408 : vector<2x32xf32>
    %410 = vector.extract_strided_slice %403 {offsets = [0, 32], sizes = [2, 32], strides = [1, 1]} : vector<2x96xf32> to vector<2x32xf32>
    %411 = arith.negf %410 : vector<2x32xf32>
    %412 = math.exp %411 : vector<2x32xf32>
    %cst_231 = arith.constant 1.000000e+00 : f32
    %413 = vector.broadcast %cst_231 : f32 to vector<2x32xf32>
    %414 = arith.addf %413, %412 : vector<2x32xf32>
    %415 = arith.divf %413, %414 : vector<2x32xf32>
    %416 = vector.extract_strided_slice %400 {offsets = [0, 64], sizes = [2, 32], strides = [1, 1]} : vector<2x96xf32> to vector<2x32xf32>
    %417 = vector.extract_strided_slice %402 {offsets = [0, 64], sizes = [2, 32], strides = [1, 1]} : vector<2x96xf32> to vector<2x32xf32>
    %418 = vector.broadcast %359 : vector<1x32xf32> to vector<2x32xf32>
    %419 = arith.addf %417, %418 : vector<2x32xf32>
    %420 = arith.mulf %409, %419 : vector<2x32xf32>
    %421 = arith.addf %416, %420 : vector<2x32xf32>
    %422 = math.tanh %421 : vector<2x32xf32>
    %cst_232 = arith.constant 1.000000e+00 : f32
    %423 = vector.broadcast %cst_232 : f32 to vector<2x32xf32>
    %424 = arith.subf %423, %415 : vector<2x32xf32>
    %425 = arith.mulf %424, %422 : vector<2x32xf32>
    %426 = arith.mulf %415, %397 : vector<2x32xf32>
    %427 = arith.addf %425, %426 : vector<2x32xf32>
    %c2_i32_233 = arith.constant 2 : i32
    %c2_i32_234 = arith.constant 2 : i32
    %428 = arith.muli %c2_i32_233, %c2_i32_234 : i32
    %429 = arith.index_cast %428 : i32 to index
    %c0_235 = arith.constant 0 : index
    %430 = vector.load %arg18[%429, %c0_235] : memref<8x96xf32, #tpu.memory_space<vmem>>, vector<2x96xf32>
    %431 = arith.truncf %427 : vector<2x32xf32> to vector<2x32xbf16>
    %cst_236 = arith.constant dense<0.000000e+00> : vector<2x96xf32>
    %432 = tpu.matmul %431, %360, %cst_236 {dimension_numbers = #tpu.dot_dimension_numbers<[1], [0], [0], [1], [0, 0, 1, 1], [], []>} : vector<2x32xbf16>, vector<32x96xbf16>, vector<2x96xf32> -> vector<2x96xf32>
    %433 = arith.addf %430, %432 : vector<2x96xf32>
    %434 = vector.extract_strided_slice %433 {offsets = [0, 0], sizes = [2, 32], strides = [1, 1]} : vector<2x96xf32> to vector<2x32xf32>
    %435 = arith.negf %434 : vector<2x32xf32>
    %436 = math.exp %435 : vector<2x32xf32>
    %cst_237 = arith.constant 1.000000e+00 : f32
    %437 = vector.broadcast %cst_237 : f32 to vector<2x32xf32>
    %438 = arith.addf %437, %436 : vector<2x32xf32>
    %439 = arith.divf %437, %438 : vector<2x32xf32>
    %440 = vector.extract_strided_slice %433 {offsets = [0, 32], sizes = [2, 32], strides = [1, 1]} : vector<2x96xf32> to vector<2x32xf32>
    %441 = arith.negf %440 : vector<2x32xf32>
    %442 = math.exp %441 : vector<2x32xf32>
    %cst_238 = arith.constant 1.000000e+00 : f32
    %443 = vector.broadcast %cst_238 : f32 to vector<2x32xf32>
    %444 = arith.addf %443, %442 : vector<2x32xf32>
    %445 = arith.divf %443, %444 : vector<2x32xf32>
    %446 = vector.extract_strided_slice %430 {offsets = [0, 64], sizes = [2, 32], strides = [1, 1]} : vector<2x96xf32> to vector<2x32xf32>
    %447 = vector.extract_strided_slice %432 {offsets = [0, 64], sizes = [2, 32], strides = [1, 1]} : vector<2x96xf32> to vector<2x32xf32>
    %448 = vector.broadcast %359 : vector<1x32xf32> to vector<2x32xf32>
    %449 = arith.addf %447, %448 : vector<2x32xf32>
    %450 = arith.mulf %439, %449 : vector<2x32xf32>
    %451 = arith.addf %446, %450 : vector<2x32xf32>
    %452 = math.tanh %451 : vector<2x32xf32>
    %cst_239 = arith.constant 1.000000e+00 : f32
    %453 = vector.broadcast %cst_239 : f32 to vector<2x32xf32>
    %454 = arith.subf %453, %445 : vector<2x32xf32>
    %455 = arith.mulf %454, %452 : vector<2x32xf32>
    %456 = arith.mulf %445, %427 : vector<2x32xf32>
    %457 = arith.addf %455, %456 : vector<2x32xf32>
    %c3_i32_240 = arith.constant 3 : i32
    %c2_i32_241 = arith.constant 2 : i32
    %458 = arith.muli %c3_i32_240, %c2_i32_241 : i32
    %459 = arith.index_cast %458 : i32 to index
    %c0_242 = arith.constant 0 : index
    %460 = vector.load %arg18[%459, %c0_242] : memref<8x96xf32, #tpu.memory_space<vmem>>, vector<2x96xf32>
    %461 = arith.truncf %457 : vector<2x32xf32> to vector<2x32xbf16>
    %cst_243 = arith.constant dense<0.000000e+00> : vector<2x96xf32>
    %462 = tpu.matmul %461, %360, %cst_243 {dimension_numbers = #tpu.dot_dimension_numbers<[1], [0], [0], [1], [0, 0, 1, 1], [], []>} : vector<2x32xbf16>, vector<32x96xbf16>, vector<2x96xf32> -> vector<2x96xf32>
    %463 = arith.addf %460, %462 : vector<2x96xf32>
    %464 = vector.extract_strided_slice %463 {offsets = [0, 0], sizes = [2, 32], strides = [1, 1]} : vector<2x96xf32> to vector<2x32xf32>
    %465 = arith.negf %464 : vector<2x32xf32>
    %466 = math.exp %465 : vector<2x32xf32>
    %cst_244 = arith.constant 1.000000e+00 : f32
    %467 = vector.broadcast %cst_244 : f32 to vector<2x32xf32>
    %468 = arith.addf %467, %466 : vector<2x32xf32>
    %469 = arith.divf %467, %468 : vector<2x32xf32>
    %470 = vector.extract_strided_slice %463 {offsets = [0, 32], sizes = [2, 32], strides = [1, 1]} : vector<2x96xf32> to vector<2x32xf32>
    %471 = arith.negf %470 : vector<2x32xf32>
    %472 = math.exp %471 : vector<2x32xf32>
    %cst_245 = arith.constant 1.000000e+00 : f32
    %473 = vector.broadcast %cst_245 : f32 to vector<2x32xf32>
    %474 = arith.addf %473, %472 : vector<2x32xf32>
    %475 = arith.divf %473, %474 : vector<2x32xf32>
    %476 = vector.extract_strided_slice %460 {offsets = [0, 64], sizes = [2, 32], strides = [1, 1]} : vector<2x96xf32> to vector<2x32xf32>
    %477 = vector.extract_strided_slice %462 {offsets = [0, 64], sizes = [2, 32], strides = [1, 1]} : vector<2x96xf32> to vector<2x32xf32>
    %478 = vector.broadcast %359 : vector<1x32xf32> to vector<2x32xf32>
    %479 = arith.addf %477, %478 : vector<2x32xf32>
    %480 = arith.mulf %469, %479 : vector<2x32xf32>
    %481 = arith.addf %476, %480 : vector<2x32xf32>
    %482 = math.tanh %481 : vector<2x32xf32>
    %cst_246 = arith.constant 1.000000e+00 : f32
    %483 = vector.broadcast %cst_246 : f32 to vector<2x32xf32>
    %484 = arith.subf %483, %475 : vector<2x32xf32>
    %485 = arith.mulf %484, %482 : vector<2x32xf32>
    %486 = arith.mulf %475, %457 : vector<2x32xf32>
    %487 = arith.addf %485, %486 : vector<2x32xf32>
    %c4_i32_247 = arith.constant 4 : i32
    %cst_248 = arith.constant 0.000000e+00 : f32
    %488 = vector.broadcast %cst_248 : f32 to vector<2x32xf32>
    %489 = arith.maximumf %487, %488 : vector<2x32xf32>
    %490 = arith.truncf %489 : vector<2x32xf32> to vector<2x32xbf16>
    %c0_249 = arith.constant 0 : index
    %c0_250 = arith.constant 0 : index
    %491 = vector.load %arg12[%c0_249, %c0_250] : memref<32x4xbf16, #tpu.memory_space<vmem>>, vector<32x4xbf16>
    %cst_251 = arith.constant dense<0.000000e+00> : vector<2x4xf32>
    %492 = tpu.matmul %490, %491, %cst_251 {dimension_numbers = #tpu.dot_dimension_numbers<[1], [0], [0], [1], [0, 0, 1, 1], [], []>} : vector<2x32xbf16>, vector<32x4xbf16>, vector<2x4xf32> -> vector<2x4xf32>
    %c0_252 = arith.constant 0 : index
    %c0_253 = arith.constant 0 : index
    %493 = vector.load %arg13[%c0_252, %c0_253] : memref<1x4xf32, #tpu.memory_space<vmem>>, vector<1x4xf32>
    %494 = vector.broadcast %493 : vector<1x4xf32> to vector<2x4xf32>
    %495 = arith.addf %492, %494 : vector<2x4xf32>
    %c0_254 = arith.constant 0 : index
    %c0_255 = arith.constant 0 : index
    %496 = vector.load %arg14[%c0_254, %c0_255] : memref<2x4xf32, #tpu.memory_space<vmem>>, vector<2x4xf32>
    tpu.vector_store %arg14[%c0_254, %c0_255], %495 {strides = array<i32>} : memref<2x4xf32, #tpu.memory_space<vmem>>, vector<2x4xf32>,
    return
  }
  func.func @transform_0(%arg0: i32) -> (i32, i32, i32) {
    %c0_i32 = arith.constant 0 : i32
    %c0_i32_0 = arith.constant 0 : i32
    %c0_i32_1 = arith.constant 0 : i32
    return %arg0, %c0_i32, %c0_i32_0 : i32, i32, i32
  }
  func.func @transform_1(%arg0: i32) -> (i32, i32, i32) {
    %c0_i32 = arith.constant 0 : i32
    %c0_i32_0 = arith.constant 0 : i32
    %c0_i32_1 = arith.constant 0 : i32
    %c0_i32_2 = arith.constant 0 : i32
    return %c0_i32, %c0_i32_0, %c0_i32_1 : i32, i32, i32
  }
  func.func @transform_2(%arg0: i32) -> (i32, i32) {
    %c0_i32 = arith.constant 0 : i32
    %c0_i32_0 = arith.constant 0 : i32
    %c0_i32_1 = arith.constant 0 : i32
    return %c0_i32, %c0_i32_0 : i32, i32
  }
  func.func @transform_3(%arg0: i32) -> (i32, i32, i32) {
    %c0_i32 = arith.constant 0 : i32
    %c0_i32_0 = arith.constant 0 : i32
    %c0_i32_1 = arith.constant 0 : i32
    %c0_i32_2 = arith.constant 0 : i32
    return %c0_i32, %c0_i32_0, %c0_i32_1 : i32, i32, i32
  }
  func.func @transform_4(%arg0: i32) -> (i32, i32) {
    %c0_i32 = arith.constant 0 : i32
    %c0_i32_0 = arith.constant 0 : i32
    %c0_i32_1 = arith.constant 0 : i32
    return %c0_i32, %c0_i32_0 : i32, i32
  }
  func.func @transform_5(%arg0: i32) -> (i32, i32) {
    %c0_i32 = arith.constant 0 : i32
    %c0_i32_0 = arith.constant 0 : i32
    %c0_i32_1 = arith.constant 0 : i32
    return %c0_i32, %c0_i32_0 : i32, i32
  }
  func.func @transform_6(%arg0: i32) -> (i32, i32) {
    %c0_i32 = arith.constant 0 : i32
    %c0_i32_0 = arith.constant 0 : i32
    %c0_i32_1 = arith.constant 0 : i32
    return %c0_i32, %c0_i32_0 : i32, i32
  }
  func.func @transform_7(%arg0: i32) -> (i32, i32) {
    %c0_i32 = arith.constant 0 : i32
    %c0_i32_0 = arith.constant 0 : i32
    %c0_i32_1 = arith.constant 0 : i32
    return %c0_i32, %c0_i32_0 : i32, i32
  }
  func.func @transform_8(%arg0: i32) -> (i32, i32) {
    %c0_i32 = arith.constant 0 : i32
    %c0_i32_0 = arith.constant 0 : i32
    %c0_i32_1 = arith.constant 0 : i32
    return %c0_i32, %c0_i32_0 : i32, i32
  }
  func.func @transform_9(%arg0: i32) -> (i32, i32) {
    %c0_i32 = arith.constant 0 : i32
    %c0_i32_0 = arith.constant 0 : i32
    %c0_i32_1 = arith.constant 0 : i32
    return %c0_i32, %c0_i32_0 : i32, i32
  }
  func.func @transform_10(%arg0: i32) -> (i32, i32) {
    %c0_i32 = arith.constant 0 : i32
    %c0_i32_0 = arith.constant 0 : i32
    %c0_i32_1 = arith.constant 0 : i32
    return %c0_i32, %c0_i32_0 : i32, i32
  }
  func.func @transform_11(%arg0: i32) -> (i32, i32) {
    %c0_i32 = arith.constant 0 : i32
    %c0_i32_0 = arith.constant 0 : i32
    %c0_i32_1 = arith.constant 0 : i32
    return %c0_i32, %c0_i32_0 : i32, i32
  }
  func.func @transform_12(%arg0: i32) -> (i32, i32) {
    %c0_i32 = arith.constant 0 : i32
    %c0_i32_0 = arith.constant 0 : i32
    %c0_i32_1 = arith.constant 0 : i32
    return %c0_i32, %c0_i32_0 : i32, i32
  }
  func.func @transform_13(%arg0: i32) -> (i32, i32) {
    %c0_i32 = arith.constant 0 : i32
    %c0_i32_0 = arith.constant 0 : i32
    return %arg0, %c0_i32 : i32, i32
  }
}

</mosaic_0001>

<bundles_post_ra>
// kernel: forward.1
= control target key start
LH: loop header
LB: loop body
LE: loop exit
PB: predicated region body
PF: predicated region fallthrough
CT: control target
= control target key end

     0   :  { %18 = vsyncpa [#allocation8], 0  ;;  %s3934_s0 = inlined_call_operand.vmem [shape: f32[2,16,4], index: 0, kind: input, shape index: {}]   ;;  %s3935_s1 = inlined_call_operand.hbm [shape: bf16[7,4,8], index: 1, kind: input, shape index: {}]   ;;  %s3936_s2 = inlined_call_operand.hbm [shape: f32[3,8], index: 2, kind: input, shape index: {}]   ;;  %s3937_s3 = inlined_call_operand.vmem [shape: bf16[7,8,16], index: 3, kind: input, shape index: {}]   ;;  %s3938_s4 = inlined_call_operand.hbm [shape: f32[3,16], index: 4, kind: input, shape index: {}]   ;;  %s3939_s5 = inlined_call_operand.hbm [shape: bf16[16,96], index: 5, kind: input, shape index: {}]   ;;  %s3940_s6 = inlined_call_operand.vmem [shape: bf16[32,96], index: 6, kind: input, shape index: {}]   ;;  %s3941_s7 = inlined_call_operand.hbm [shape: f32[1,128], index: 7, kind: input, shape index: {}]   ;;  %s3942_s8 = inlined_call_operand.vmem [shape: bf16[32,96], index: 8, kind: input, shape index: {}]   ;;  %s3943_s9 = inlined_call_operand.vmem [shape: bf16[32,96], index: 9, kind: input, shape index: {}]   ;;  %s3944_s10 = inlined_call_operand.vmem [shape: f32[1,128], index: 10, kind: input, shape index: {}]   ;;  %s3945_s11 = inlined_call_operand.vmem [shape: bf16[32,4], index: 11, kind: input, shape index: {}]   ;;  %s3946_s12 = inlined_call_operand.vmem [shape: f32[1,4], index: 12, kind: input, shape index: {}]   ;;  %s3947_s13 = inlined_call_operand.hbm [shape: f32[2,4], index: 13, kind: output, shape index: {}]  }
   0x1   :  { %19 = vsyncpa [#allocation11], 0 }
   0x2   :  { %20 = vsyncpa [#allocation14], 0 }
   0x3   :  { %21 = vsyncpa [#allocation9], 0  ;;  %s3428_s25 = smov [#allocation10]   ;;  %s3429_s27 = smov [#allocation13]  }
   0x4   :  { %s42_s26 = sshll.u32 %s3428_s25, 4  ;;  %s63_s28 = sshll.u32 %s3429_s27, 4  ;;  %s43_s26 = int_to_ptr.vmem [resolvable:$true] %s42_s26  ;;  %s3512_s28 = int_to_ptr.vmem [resolvable:$true] %s63_s28 }
   0x5   :  { %s3288_s14 = scalar_lea.hbm %s3936_s2, 64 }
   0x6   :  { %p3289_p0 = scmp.ne.s32.totalorder %s3936_s2, %s3288_s14  ;;  %p3292_p1 = scmp.lt.u32.totalorder %s3288_s14, %s3936_s2 }
   0x8   :  { %p3294_p2 = pnand %p3292_p1, %p3289_p0 }
   0xa   :  { %3297 = shalt.err (!%p3294_p2)
}
   0xb   :  { %s3298_s19 = scalar_lea.vmem %s43_s26, 64  ;;  %p3303_p4 = scmp.lt.s32.totalorder %s43_s26, %s43_s26 }
   0xc   :  { %p3299_p3 = scmp.ne.s32.totalorder %s43_s26, %s3298_s19  ;;  %p3304_p5 = scmp.lt.s32.totalorder %s3298_s19, %s3298_s19 }
   0xe   :  { %p3305_p6 = por %p3304_p5, %p3303_p4 }
  0x10   :  { %p3306_p7 = pnand %p3305_p6, %p3299_p3 }
  0x12   :  { %3309 = shalt.err (!%p3306_p7)
}
  0x13   :  { %45 = dma.hbm_to_vmem [thread:$0]  %s3936_s2, 64, %s43_s26, [#allocation11]  }
  0x14   :  { %s3310_s24 = scalar_lea.hbm %s3939_s5, 128 }
  0x15   :  { %p3311_p8 = scmp.ne.s32.totalorder %s3939_s5, %s3310_s24  ;;  %p3314_p9 = scmp.lt.u32.totalorder %s3310_s24, %s3939_s5 }
  0x17   :  { %p3316_p10 = pnand %p3314_p9, %p3311_p8 }
  0x19   :  { %3319 = shalt.err (!%p3316_p10)
}
  0x1a   :  { %s3320_s14 = scalar_lea.vmem %s3512_s28, 128  ;;  %p3325_p12 = scmp.lt.s32.totalorder %s3512_s28, %s3512_s28 }
  0x1b   :  { %p3321_p11 = scmp.ne.s32.totalorder %s3512_s28, %s3320_s14  ;;  %p3326_p13 = scmp.lt.s32.totalorder %s3320_s14, %s3320_s14 }
  0x1d   :  { %p3327_p0 = por %p3326_p13, %p3325_p12 }
  0x1f   :  { %p3328_p1 = pnand %p3327_p0, %p3321_p11 }
  0x21   :  { %3331 = shalt.err (!%p3328_p1)
}
  0x22   :  { %s3430_s2 = smov 64   ;;  %s3431_s26 = smov 4  }
  0x23   :  { %69 = dma.hbm_to_vmem [thread:$0]  %s3939_s5, 128, %s3512_s28, [#allocation14], %s3430_s2, %s3430_s2, %s3431_s26  }
  0x24   :  { %s3432_s17 = smov [#allocation7]   ;;  %s3332_s21 = scalar_lea.hbm %s3935_s1, 224 }
  0x25   :  { %s29_s18 = sshll.u32 %s3432_s17, 4  ;;  %p3333_p2 = scmp.ne.s32.totalorder %s3935_s1, %s3332_s21  ;;  %s30_s18 = int_to_ptr.vmem [resolvable:$true] %s29_s18 }
  0x26   :  { %p3336_p3 = scmp.lt.u32.totalorder %s3332_s21, %s3935_s1 }
  0x28   :  { %p3338_p4 = pnand %p3336_p3, %p3333_p2 }
  0x2a   :  { %3341 = shalt.err (!%p3338_p4)
}
  0x2b   :  { %s3342_s27 = scalar_lea.vmem %s30_s18, 224  ;;  %p3347_p6 = scmp.lt.s32.totalorder %s30_s18, %s30_s18 }
  0x2c   :  { %p3343_p5 = scmp.ne.s32.totalorder %s30_s18, %s3342_s27  ;;  %p3348_p7 = scmp.lt.s32.totalorder %s3342_s27, %s3342_s27 }
  0x2e   :  { %p3349_p8 = por %p3348_p7, %p3347_p6 }
  0x30   :  { %p3350_p9 = pnand %p3349_p8, %p3343_p5 }
  0x32   :  { %3353 = shalt.err (!%p3350_p9)
}
  0x33   :  { %s3433_s5 = smov 32   ;;  %s3434_s28 = smov 2  }
  0x34   :  { %35 = dma.hbm_to_vmem [thread:$0]  %s3935_s1, 224, %s30_s18, [#allocation8], %s3433_s5, %s3433_s5, %s3434_s28  }
  0x35   :  { %s3435_s14 = smov [#allocation12]   ;;  %s3436_s15 = smov [#allocation15]  }
  0x36   :  { %s54_s26 = sshll.u32 %s3435_s14, 4  ;;  %s78_s16 = sshll.u32 %s3436_s15, 4  ;;  %s55_s26 = int_to_ptr.vmem [resolvable:$true] %s54_s26  ;;  %s79_s16 = int_to_ptr.vmem [resolvable:$true] %s78_s16 }
  0x37   :  { %s3354_s20 = scalar_lea.hbm %s3938_s4, 64 }
  0x38   :  { %p3355_p10 = scmp.ne.s32.totalorder %s3938_s4, %s3354_s20  ;;  %p3358_p11 = scmp.lt.u32.totalorder %s3354_s20, %s3938_s4 }
  0x3a   :  { %p3360_p12 = pnand %p3358_p11, %p3355_p10 }
  0x3c   :  { %3363 = shalt.err (!%p3360_p12)
}
  0x3d   :  { %s3364_s1 = scalar_lea.vmem %s55_s26, 64  ;;  %p3369_p0 = scmp.lt.s32.totalorder %s55_s26, %s55_s26 }
  0x3e   :  { %p3365_p13 = scmp.ne.s32.totalorder %s55_s26, %s3364_s1  ;;  %p3370_p1 = scmp.lt.s32.totalorder %s3364_s1, %s3364_s1 }
  0x40   :  { %p3371_p2 = por %p3370_p1, %p3369_p0 }
  0x42   :  { %p3372_p3 = pnand %p3371_p2, %p3365_p13 }
  0x44   :  { %3375 = shalt.err (!%p3372_p3)
}
  0x45   :  { %57 = dma.hbm_to_vmem [thread:$0]  %s3938_s4, 64, %s55_s26, [#allocation11]  }
  0x46   :  { %s3376_s28 = scalar_lea.hbm %s3941_s7, 16 }
  0x47   :  { %p3377_p4 = scmp.ne.s32.totalorder %s3941_s7, %s3376_s28  ;;  %p3380_p5 = scmp.lt.u32.totalorder %s3376_s28, %s3941_s7 }
  0x49   :  { %p3382_p6 = pnand %p3380_p5, %p3377_p4 }
  0x4b   :  { %3385 = shalt.err (!%p3382_p6)
}
  0x4c   :  { %s3386_s17 = scalar_lea.vmem %s79_s16, 16  ;;  %s3390_s19 = scalar_lea.vmem %s79_s16, 32 }
  0x4d   :  { %p3387_p7 = scmp.ne.s32.totalorder %s79_s16, %s3386_s17  ;;  %p3391_p8 = scmp.lt.s32.totalorder %s79_s16, %s79_s16 }
  0x4e   :  { %p3392_p9 = scmp.lt.s32.totalorder %s3390_s19, %s3386_s17 }
  0x50   :  { %p3393_p10 = por %p3392_p9, %p3391_p8 }
  0x52   :  { %p3394_p11 = pnand %p3393_p10, %p3387_p7 }
  0x54   :  { %3397 = shalt.err (!%p3394_p11)
}
  0x55   :  { %81 = dma.hbm_to_vmem [thread:$0]  %s3941_s7, 16, %s79_s16, [#allocation14]  }
  0x56   :  { %3420 = dma.done.wait [#allocation8], 224  }
  0x57   :  { %3421 = vsyncadd [#allocation8], 4294967072 }
  0x58   :  { %3422 = dma.done.wait [#allocation11], 128  }
  0x59   :  { %3423 = vsyncadd [#allocation11], 4294967168 }
  0x5a   :  { %3424 = dma.done.wait [#allocation14], 144  }
  0x5b   :  { %3425 = vsyncadd [#allocation14], 4294967152  ;;  %vm108_vm0 = vcmask 26624   ;;  %vm110_vm1 = vcmask 28672   ;;  %v3437_v0 = vmov 0.0   ;;  %vm162_vm2 = vcmask 1041408  }
  0x5c   :  { %109 = vst.msk [vmem:[#allocation2] sm:$0x7] %vm108_vm0, %v3437_v0  ;;  %112 = vst.msk [vmem:[#allocation2 + $0x18] sm:$0x7] %vm108_vm0, %v3437_v0  ;;  %vm122_vm3 = vcmask 31744   ;;  %v120_v2 = vld [vmem:[%s3934_s0] sm:$0xff]  ;;  %v982_v61 = vlaneseq }
  0x5d   :  { %111 = vst.msk [vmem:[#allocation2 + $0x13] sm:$0x1f] %vm110_vm1, %v3437_v0  ;;  %113 = vst.msk [vmem:[#allocation2 + $0x2b] sm:$0x1f] %vm110_vm1, %v3437_v0  ;;  %v147_v1 = vld [vmem:[#allocation7 + $0x2] sm:$0x3] }
  0x5e   :  { %v121_v3 = vld [vmem:[%s3934_s0 + $0x8] sm:$0xff]  ;;  %3193 = vmatprep.subr.msk.bf16.mxu0 %vm162_vm2, %v147_v1  ;;  %3195 = vmatprep.subr.msk.bf16.mxu1 %vm162_vm2, %v147_v1  ;;  %v164_v4 = vsel %vm162_vm2, %v147_v1, 0  ;;  %123 = vst.msk [vmem:[#allocation2 + $0x3] sm:$0xff] %vm122_vm3, %v120_v2  ;;  %v2647_v5 = vld [vmem:[%s3934_s0 + $0x10] sm:$0xff]  ;;  %v130_v6 = vld [vmem:[#allocation7] sm:$0x3] }
  0x5f   :  { %124 = vst.msk [vmem:[#allocation2 + $0xb] sm:$0xff] %vm122_vm3, %v121_v3  ;;  %v2648_v7 = vld [vmem:[%s3934_s0 + $0x18] sm:$0xff]  ;;  %2844 = vmatpush3.bf16.msra.mxu0 %v164_v4  ;;  %2856 = vmatpush3.bf16.msra.mxu1 %v164_v4  ;;  %128 = vst.msk [vmem:[#allocation2 + $0x1b] sm:$0xff] %vm122_vm3, %v2647_v5  ;;  %v221_v19 = vsel %vm162_vm2, %v130_v6, 0  ;;  %v374_v22 = vld [vmem:[#allocation7 + $0x4] sm:$0x3] }
  0x60   :  { %129 = vst.msk [vmem:[#allocation2 + $0x23] sm:$0xff] %vm122_vm3, %v2648_v7  ;;  %3194 = vmatprep.subr.msk.bf16.mxu0 %vm162_vm2, %v130_v6  ;;  %3196 = vmatprep.subr.msk.bf16.mxu1 %vm162_vm2, %v130_v6  ;;  %v384_v27 = vsel %vm162_vm2, %v374_v22, 0  ;;  %v495_v29 = vld [vmem:[#allocation7 + $0x6] sm:$0x3]  ;;  %v616_v36 = vld [vmem:[#allocation7 + $0x8] sm:$0x3] }
  0x61   :  { %v505_v34 = vsel %vm162_vm2, %v495_v29, 0  ;;  %v626_v41 = vsel %vm162_vm2, %v616_v36, 0  ;;  %v737_v43 = vld [vmem:[#allocation7 + $0xa] sm:$0x3]  ;;  %v858_v50 = vld [vmem:[#allocation7 + $0xc] sm:$0x3] }
  0x62   :  { %v747_v48 = vsel %vm162_vm2, %v737_v43, 0  ;;  %v868_v55 = vsel %vm162_vm2, %v858_v50, 0  ;;  %vm116_vm4 = vcmask 61440   ;;  %vm114_vm5 = vcmask 59392   ;;  %v2680_v59 = vld [vmem:[%s3937_s3 + $0x4] sm:$0xf] }
  0x63   :  { %117 = vst.msk [vmem:[#allocation3 + $0xb] sm:$0x1f] %vm116_vm4, %v3437_v0  ;;  %119 = vst.msk [vmem:[#allocation3 + $0x1b] sm:$0x1f] %vm116_vm4, %v3437_v0  ;;  %vm1047_vm6 = vcmask 1043456   ;;  %vm3438_vm7 = vmmov 0  }
  0x64   :  { %115 = vst.msk [vmem:[#allocation3] sm:$0x7] %vm114_vm5, %v3437_v0  ;;  %118 = vst.msk [vmem:[#allocation3 + $0x10] sm:$0x7] %vm114_vm5, %v3437_v0  ;;  %v1049_v60 = vsel %vm1047_vm6, %v2680_v59, 0  ;;  %v3666_v62 = vshrl.u32 %v982_v61, 7 }
  0x65   :  { %v978_v1 = vld [vmem:[#allocation10] sm:$0x7]  ;;  %vm1025_vm10 = vcmask 60416   ;;  %vm1021_vm12 = vcmask 64512   ;;  %vm1023_vm13 = vcmask 64516   ;;  %vm1753_vm0 = vcmask 123904  }
  0x66   :  { %v139_v8 = vld [vmem:[#allocation2 + $0x1] ss:$2 sm:$0xff]  ;;  %v149_v9 = vld [vmem:[#allocation2 + $0x2] ss:$2 sm:$0xff]  ;;  %v141_v11 = vld [vmem:[#allocation2 + $0x11] ss:$2 sm:$0xff] }
  0x67   :  { %v131_v10 = vld [vmem:[#allocation2] ss:$2 sm:$0xff]  ;;  %v133_v13 = vld [vmem:[#allocation2 + $0x10] ss:$2 sm:$0xff]  ;;  %v144_v14 = vpack.c.bf16 %v141_v11, %v139_v8  ;;  %v376_v24 = vld [vmem:[#allocation2 + $0x3] ss:$2 sm:$0xff] }
  0x68   :  { %v151_v12 = vld [vmem:[#allocation2 + $0x12] ss:$2 sm:$0xff]  ;;  %v143_v16 = vld [vmem:[#allocation2 + $0x21] ss:$2 sm:$0x1f]  ;;  %v136_v21 = vpack.c.bf16 %v133_v13, %v131_v10  ;;  %v984_v63 = vsub.s32 0, %v3666_v62 }
  0x69   :  { %v154_v15 = vpack.c.bf16 %v151_v12, %v149_v9  ;;  %v153_v17 = vld [vmem:[#allocation2 + $0x22] ss:$2 sm:$0x1f]  ;;  %v145_v18 = vpack.c.bf16 %v143_v16, %v143_v16  ;;  %2845 = vmatprep.mubr.msk.bf16.mxu0 %vm122_vm3, %v144_v14  ;;  %v378_v25 = vld [vmem:[#allocation2 + $0x13] ss:$2 sm:$0xff]  ;;  %vm1761_vm1 = vcmask 125954  }
  0x6a   :  { %v155_v20 = vpack.c.bf16 %v153_v17, %v153_v17  ;;  %v135_v23 = vld [vmem:[#allocation2 + $0x20] ss:$2 sm:$0x1f]  ;;  %v381_v28 = vpack.c.bf16 %v378_v25, %v376_v24  ;;  %v380_v30 = vld [vmem:[#allocation2 + $0x23] ss:$2 sm:$0x1f]  ;;  %v985_v2 = vrot.slane %v978_v1, %v984_v63 }
  0x6b   :  { %2857 = vmatprep.mubr.msk.bf16.mxu1 %vm122_vm3, %v154_v15  ;;  %2846 = vmatmul.mubr.msk.bf16.vlgmr.msra.gmra.mrb[0].mxu0 %vm122_vm3, %v145_v18  ;;  %v137_v26 = vpack.c.bf16 %v135_v23, %v135_v23  ;;  %v497_v31 = vld [vmem:[#allocation2 + $0x4] ss:$2 sm:$0xff]  ;;  %v499_v32 = vld [vmem:[#allocation2 + $0x14] ss:$2 sm:$0xff]  ;;  %v382_v33 = vpack.c.bf16 %v380_v30, %v380_v30  ;;  %v618_v38 = vld [vmem:[#allocation2 + $0x5] ss:$2 sm:$0xff] }
  0x6c   :  { %2858 = vmatmul.mubr.msk.bf16.vlgmr.msra.gmra.mrb[0].mxu1 %vm122_vm3, %v155_v20  ;;  %2850 = vmatpush3.bf16.msra.mxu0 %v221_v19  ;;  %v502_v35 = vpack.c.bf16 %v499_v32, %v497_v31  ;;  %v501_v37 = vld [vmem:[#allocation2 + $0x24] ss:$2 sm:$0x1f]  ;;  %v620_v39 = vld [vmem:[#allocation2 + $0x15] ss:$2 sm:$0xff]  ;;  %v1009_v23 = vsub.s32 1, %v3666_v62 }
  0x6d   :  { %2862 = vmatpush3.bf16.msra.mxu1 %v221_v19  ;;  %2851 = vmatprep.mubr.msk.bf16.mxu0 %vm122_vm3, %v136_v21  ;;  %v503_v40 = vpack.c.bf16 %v501_v37, %v501_v37  ;;  %v623_v42 = vpack.c.bf16 %v620_v39, %v618_v38  ;;  %v622_v44 = vld [vmem:[#allocation2 + $0x25] ss:$2 sm:$0x1f]  ;;  %v739_v45 = vld [vmem:[#allocation2 + $0x6] ss:$2 sm:$0xff]  ;;  %v1016_v24 = vsub.s32 2, %v3666_v62 }
  0x6e   :  { %2863 = vmatprep.mubr.msk.bf16.mxu1 %vm122_vm3, %v144_v14  ;;  %3197 = vmatprep.subr.msk.bf16.mxu0 %vm162_vm2, %v374_v22  ;;  %v741_v46 = vld [vmem:[#allocation2 + $0x16] ss:$2 sm:$0xff]  ;;  %v624_v47 = vpack.c.bf16 %v622_v44, %v622_v44  ;;  %v743_v51 = vld [vmem:[#allocation2 + $0x26] ss:$2 sm:$0x1f]  ;;  %vm1842_vm4 = vcmask 261120  }
  0x6f   :  { %3198 = vmatprep.subr.msk.bf16.mxu1 %vm162_vm2, %v374_v22  ;;  %v744_v49 = vpack.c.bf16 %v741_v46, %v739_v45  ;;  %v860_v52 = vld [vmem:[#allocation2 + $0x7] ss:$2 sm:$0xff]  ;;  %v862_v53 = vld [vmem:[#allocation2 + $0x17] ss:$2 sm:$0xff]  ;;  %v745_v54 = vpack.c.bf16 %v743_v51, %v743_v51  ;;  %vm1923_vm5 = vcmask 253952   ;;  %s3441_s29 = smov [#allocation16]  }
  0x70   :  { %v865_v56 = vpack.c.bf16 %v862_v53, %v860_v52  ;;  %v864_v57 = vld [vmem:[#allocation2 + $0x27] ss:$2 sm:$0x1f]  ;;  %v2691_v61 = vld [vmem:[%s3937_s3 + $0x10] sm:$0xf]  ;;  %s2636_s30 = sshll.u32 %s3441_s29, 4  ;;  %s2637_s30 = int_to_ptr.vmem [resolvable:$true] %s2636_s30 }
  0x71   :  { %v866_v58 = vpack.c.bf16 %v864_v57, %v864_v57  ;;  %v2685_v51 = vld [vmem:[%s3937_s3 + $0x8] sm:$0xf]  ;;  %s3398_s14 = scalar_lea.vmem %s2637_s30, 32  ;;  %p3403_p13 = scmp.lt.s32.totalorder %s2637_s30, %s2637_s30 }
  0x72   :  { %p3399_p12 = scmp.ne.s32.totalorder %s2637_s30, %s3398_s14  ;;  %p3404_p0 = scmp.lt.s32.totalorder %s3398_s14, %s3398_s14 }
  0x74   :  { %p3405_p1 = por %p3404_p0, %p3403_p13 }
  0x76   :  { %p3406_p2 = pnand %p3405_p1, %p3399_p12 }
  0x77   :  { %2852 = vmatmul.mubr.msk.bf16.vlgmr.msra.gmra.mrb[0].mxu0 %vm122_vm3, %v137_v26  ;;  %v1010_v26 = vrot.slane %v978_v1, %v1009_v23 }
  0x78   :  { %2864 = vmatmul.mubr.msk.bf16.vlgmr.msra.gmra.mrb[0].mxu1 %vm122_vm3, %v145_v18  ;;  %2868 = vmatpush3.bf16.msra.mxu0 %v384_v27 }
  0x79   :  { %2874 = vmatpush3.bf16.msra.mxu1 %v384_v27  ;;  %2869 = vmatprep.mubr.msk.bf16.mxu0 %vm122_vm3, %v154_v15 }
  0x7a   :  { %2875 = vmatprep.mubr.msk.bf16.mxu1 %vm122_vm3, %v381_v28  ;;  %3199 = vmatprep.subr.msk.bf16.mxu0 %vm162_vm2, %v495_v29 }
  0x7b   :  { %3200 = vmatprep.subr.msk.bf16.mxu1 %vm162_vm2, %v495_v29  ;;  %v1017_v29 = vrot.slane %v978_v1, %v1016_v24 }
  0x83   :  { %2870 = vmatmul.mubr.msk.bf16.vlgmr.msra.gmra.mrb[0].mxu0 %vm122_vm3, %v155_v20 }
  0x84   :  { %2876 = vmatmul.mubr.msk.bf16.vlgmr.msra.gmra.mrb[0].mxu1 %vm122_vm3, %v382_v33  ;;  %2880 = vmatpush3.bf16.msra.mxu0 %v505_v34 }
  0x85   :  { %2886 = vmatpush3.bf16.msra.mxu1 %v505_v34  ;;  %2881 = vmatprep.mubr.msk.bf16.mxu0 %vm122_vm3, %v381_v28 }
  0x86   :  { %2887 = vmatprep.mubr.msk.bf16.mxu1 %vm122_vm3, %v502_v35  ;;  %3201 = vmatprep.subr.msk.bf16.mxu0 %vm162_vm2, %v616_v36 }
  0x87   :  { %3202 = vmatprep.subr.msk.bf16.mxu1 %vm162_vm2, %v616_v36 }
  0x8f   :  { %2882 = vmatmul.mubr.msk.bf16.vlgmr.msra.gmra.mrb[0].mxu0 %vm122_vm3, %v382_v33 }
  0x90   :  { %2888 = vmatmul.mubr.msk.bf16.vlgmr.msra.gmra.mrb[0].mxu1 %vm122_vm3, %v503_v40  ;;  %2892 = vmatpush3.bf16.msra.mxu0 %v626_v41 }
  0x91   :  { %2898 = vmatpush3.bf16.msra.mxu1 %v626_v41  ;;  %2893 = vmatprep.mubr.msk.bf16.mxu0 %vm122_vm3, %v502_v35 }
  0x92   :  { %2899 = vmatprep.mubr.msk.bf16.mxu1 %vm122_vm3, %v623_v42  ;;  %3203 = vmatprep.subr.msk.bf16.mxu0 %vm162_vm2, %v737_v43 }
  0x93   :  { %3204 = vmatprep.subr.msk.bf16.mxu1 %vm162_vm2, %v737_v43 }
  0x9b   :  { %2894 = vmatmul.mubr.msk.bf16.vlgmr.msra.gmra.mrb[0].mxu0 %vm122_vm3, %v503_v40 }
  0x9c   :  { %2900 = vmatmul.mubr.msk.bf16.vlgmr.msra.gmra.mrb[0].mxu1 %vm122_vm3, %v624_v47  ;;  %2904 = vmatpush3.bf16.msra.mxu0 %v747_v48 }
  0x9d   :  { %2910 = vmatpush3.bf16.msra.mxu1 %v747_v48  ;;  %2905 = vmatprep.mubr.msk.bf16.mxu0 %vm122_vm3, %v623_v42  ;;  %v1027_v42 = vld [vmem:[%s3937_s3] sm:$0xf] }
  0x9e   :  { %2911 = vmatprep.mubr.msk.bf16.mxu1 %vm122_vm3, %v744_v49  ;;  %3205 = vmatprep.subr.msk.bf16.mxu0 %vm162_vm2, %v858_v50  ;;  %v1096_v48 = vsel %vm1047_vm6, %v1027_v42, 0 }
  0x9f   :  { %3206 = vmatprep.subr.msk.bf16.mxu1 %vm162_vm2, %v858_v50  ;;  %vm1783_vm2 = vcmask 130048  }
  0xa7   :  { %2906 = vmatmul.mubr.msk.bf16.vlgmr.msra.gmra.mrb[0].mxu0 %vm122_vm3, %v624_v47 }
  0xa8   :  { %2912 = vmatmul.mubr.msk.bf16.vlgmr.msra.gmra.mrb[0].mxu1 %vm122_vm3, %v745_v54  ;;  %2916 = vmatpush3.bf16.msra.mxu0 %v868_v55 }
  0xa9   :  { %2922 = vmatpush3.bf16.msra.mxu1 %v868_v55  ;;  %2917 = vmatprep.mubr.msk.bf16.mxu0 %vm122_vm3, %v744_v49 }
  0xaa   :  { %2923 = vmatprep.mubr.msk.bf16.mxu1 %vm122_vm3, %v865_v56  ;;  %2927 = vmatprep.subr.bf16.mxu0 %v3437_v0  ;;  %v2688_v56 = vld [vmem:[%s3937_s3 + $0xc] sm:$0xf] }
  0xab   :  { %2939 = vmatprep.subr.bf16.mxu1 %v3437_v0  ;;  %v1331_v59 = vsel %vm1047_vm6, %v2688_v56, 0 }
  0xb3   :  { %2918 = vmatmul.mubr.msk.bf16.vlgmr.msra.gmra.mrb[0].mxu0 %vm122_vm3, %v745_v54  ;;  %v1232_v54 = vsel %vm1047_vm6, %v2685_v51, 0 }
  0xb4   :  { %2924 = vmatmul.mubr.msk.bf16.vlgmr.msra.gmra.mrb[0].mxu1 %vm122_vm3, %v866_v58  ;;  %2929 = vmatprep.mubr.msk.bf16.mxu0 %vm3438_vm7, %v3437_v0  ;;  %vm1827_vm3 = vcmask 785408  }
  0xb5   :  { %2941 = vmatprep.mubr.msk.bf16.mxu1 %vm3438_vm7, %v3437_v0  ;;  %2928 = vmatpush3.bf16.msra.mxu0 %v1049_v60 }
  0xb6   :  { %2940 = vmatpush3.bf16.msra.mxu1 %v1049_v60  ;;  %2933 = vmatprep.subr.bf16.mxu0 %v3437_v0 }
  0xb7   :  { %2945 = vmatprep.subr.bf16.mxu1 %v3437_v0 }
 0x186   :  { %v2919_v3 = vpop.f32.mrb[0].mxu0 }
 0x187   :  { %v2925_v4 = vpop.f32.mrb[0].mxu1  ;;  %v904_v6 = vpop.f32.mrb[1].mxu0 }
 0x188   :  { %v981_v5 = vmax.f32 %v2919_v3, %v2925_v4  ;;  %v961_v7 = vpop.f32.mrb[1].mxu1  ;;  %v2920_v9 = vpop.f32.mrb[2].mxu0  ;;  %v1430_v3 = vsel %vm1047_vm6, %v2691_v61, 0  ;;  %v2694_v4 = vld [vmem:[%s3937_s3 + $0x14] sm:$0xf] }
 0x189   :  { %v979_v8 = vmax.f32 %v904_v6, %v961_v7  ;;  %v2926_v10 = vpop.f32.mrb[2].mxu1  ;;  %v907_v12 = vpop.f32.mrb[3].mxu0  ;;  %v2697_v9 = vld [vmem:[%s3937_s3 + $0x18] sm:$0xf] }
 0x18a   :  { %v988_v11 = vadd.f32 %v985_v2, %v981_v5  ;;  %v964_v13 = vpop.f32.mrb[3].mxu1 }
 0x18b   :  { %v986_v14 = vadd.f32 %v985_v2, %v979_v8  ;;  %v980_v15 = vmax.f32 %v907_v12, %v964_v13  ;;  %v1529_v8 = vsel %vm1047_vm6, %v2694_v4, 0  ;;  %v1628_v13 = vsel %vm1047_vm6, %v2697_v9, 0 }
 0x18c   :  { %v994_v16 = vmin.f32 %v988_v11, 0.0  ;;  %vm991_vm8 = vcmp.gt.f32.partialorder %v988_v11, 0.0  ;;  %vm2091_vm6 = vcmask 256002  }
 0x18d   :  { %v992_v17 = vmin.f32 %v986_v14, 0.0  ;;  %v987_v18 = vadd.f32 %v985_v2, %v980_v15  ;;  %vm989_vm9 = vcmp.gt.f32.partialorder %v986_v14, 0.0 }
 0x18e   :  { %v999_v19 = vmul.f32 1.442695, %v994_v16  ;;  %v3753_v16 = vld [vmem:[%s3940_s6] sm:$0xff]  }
 0x18f   :  { %v995_v20 = vmul.f32 1.442695, %v992_v17  ;;  %v993_v21 = vmin.f32 %v987_v18, 0.0  ;;  %vm990_vm11 = vcmp.gt.f32.partialorder %v987_v18, 0.0 }
 0x190   :  { %3230 = vpow2.f32 %v999_v19  ;;  %v3439_v19 = vmov 0  }
 0x191   :  { %3232 = vpow2.f32 %v995_v20  ;;  %v997_v22 = vmul.f32 1.442695, %v993_v21  ;;  %v3223_v20 = vld [vmem:[#allocation13] sm:$0xff]   ;;  %v2703_v21 = vld [vmem:[#allocation15] ss:$0 sm:$0xff] }
 0x193   :  { %3234 = vpow2.f32 %v997_v22  ;;  %v1719_v22 = vld [vmem:[#allocation12] sm:$0x7] }
 0x19a   :  { %v3231_v25 = vpop.eup %3230 }
 0x19b   :  { %v3233_v27 = vpop.eup %3232  ;;  %v2679_v28 = vadd.f32 -1.0, %v3231_v25  ;;  %v1725_v25 = vrot.slane %v1719_v22, %v984_v63 }
 0x19c   :  { %v2677_v30 = vadd.f32 -1.0, %v3233_v27 }
 0x19d   :  { %v3235_v31 = vpop.eup %3234  ;;  %v1006_v32 = vsel %vm991_vm8, %v988_v11, %v2679_v28  ;;  %vm2007_vm8 = vcmask 254977  }
 0x19e   :  { %v1013_v33 = vmul.f32 %v1010_v26, %v1006_v32  ;;  %v1004_v34 = vsel %vm989_vm9, %v986_v14, %v2677_v30  ;;  %v2678_v35 = vadd.f32 -1.0, %v3235_v31  ;;  %vm2175_vm9 = vcmask 257027  }
 0x19f   :  { %v1011_v36 = vmul.f32 %v1010_v26, %v1004_v34 }
 0x1a0   :  { %v1020_v37 = vadd.f32 %v1017_v29, %v1013_v33  ;;  %v1005_v38 = vsel %vm990_vm11, %v987_v18, %v2678_v35  ;;  %v3761_v18 = vld [vmem:[%s3940_s6 + $0x8] sm:$0xff]   ;;  %s3440_s6 = smov 96  }
 0x1a1   :  { %v1018_v39 = vadd.f32 %v1017_v29, %v1011_v36  ;;  %v1012_v40 = vmul.f32 %v1010_v26, %v1005_v38  ;;  %1893 = vrot.lane.b32.xlu0 %v2703_v21, %s3440_s6 }
 0x1a2   :  { %1026 = vst.msk [vmem:[#allocation3 + $0x17] sm:$0xf] %vm1025_vm10, %v1020_v37 }
 0x1a3   :  { %1022 = vst.msk [vmem:[#allocation3 + $0x3] sm:$0xff] %vm1021_vm12, %v1018_v39  ;;  %v1019_v41 = vadd.f32 %v1017_v29, %v1012_v40 }
 0x1a5   :  { %1024 = vst.msk [vmem:[#allocation3 + $0xf] sm:$0xf0] %vm1023_vm13, %v1019_v41 }
 0x1a9   :  { %v1625_v15 = vld [vmem:[#allocation3 + $0x17] ss:$2 sm:$0x1f] }
 0x1aa   :  { %v1033_v43 = vld [vmem:[#allocation3 + $0x1] ss:$2 sm:$0xff]  ;;  %v1040_v44 = vld [vmem:[#allocation3 + $0x2] ss:$2 sm:$0xff] }
 0x1ab   :  { %v1028_v52 = vld [vmem:[#allocation3] ss:$2 sm:$0xff]  ;;  %v1227_v57 = vld [vmem:[#allocation3 + $0x3] ss:$2 sm:$0xff] }
 0x1ac   :  { %v1035_v45 = vld [vmem:[#allocation3 + $0x11] ss:$2 sm:$0x1f]  ;;  %v1042_v46 = vld [vmem:[#allocation3 + $0x12] ss:$2 sm:$0x1f] }
 0x1ad   :  { %v1036_v47 = vpack.c.bf16 %v1035_v45, %v1033_v43  ;;  %v1043_v49 = vpack.c.bf16 %v1042_v46, %v1040_v44  ;;  %v1030_v50 = vld [vmem:[#allocation3 + $0x10] ss:$2 sm:$0x1f]  ;;  %v1229_v55 = vld [vmem:[#allocation3 + $0x13] ss:$2 sm:$0x1f]  ;;  %v1743_v46 = vrot.slane %v1719_v22, %v1009_v23 }
 0x1ae   :  { %v1031_v53 = vpack.c.bf16 %v1030_v50, %v1028_v52  ;;  %v1230_v58 = vpack.c.bf16 %v1229_v55, %v1227_v57  ;;  %v1328_v60 = vld [vmem:[#allocation3 + $0x14] ss:$2 sm:$0x1f]  ;;  %v1326_v1 = vld [vmem:[#allocation3 + $0x4] ss:$2 sm:$0xff] }
 0x1af   :  { %2930 = vmatmul.mubr.msk.bf16.vlgmr.msra.gmra.mrb[4].mxu0 %vm1021_vm12, %v1036_v47  ;;  %2942 = vmatmul.mubr.msk.bf16.vlgmr.msra.gmra.mrb[4].mxu1 %vm1021_vm12, %v1043_v49  ;;  %v1329_v2 = vpack.c.bf16 %v1328_v60, %v1326_v1  ;;  %v1425_v5 = vld [vmem:[#allocation3 + $0x5] ss:$2 sm:$0xff]  ;;  %v1427_v6 = vld [vmem:[#allocation3 + $0x15] ss:$2 sm:$0x1f] }
 0x1b0   :  { %2934 = vmatpush3.bf16.msra.mxu0 %v1096_v48  ;;  %2946 = vmatpush3.bf16.msra.mxu1 %v1096_v48  ;;  %v1428_v7 = vpack.c.bf16 %v1427_v6, %v1425_v5  ;;  %v1524_v10 = vld [vmem:[#allocation3 + $0x6] ss:$2 sm:$0xff]  ;;  %v1526_v11 = vld [vmem:[#allocation3 + $0x16] ss:$2 sm:$0x1f] }
 0x1b1   :  { %2935 = vmatprep.mubr.msk.bf16.mxu0 %vm3438_vm7, %v3437_v0  ;;  %2947 = vmatprep.mubr.msk.bf16.mxu1 %vm3438_vm7, %v3437_v0  ;;  %v1527_v12 = vpack.c.bf16 %v1526_v11, %v1524_v10  ;;  %v1623_v14 = vld [vmem:[#allocation3 + $0x7] ss:$2 sm:$0xff] }
 0x1b2   :  { %2951 = vmatprep.subr.bf16.mxu0 %v3437_v0  ;;  %2957 = vmatprep.subr.bf16.mxu1 %v3437_v0  ;;  %v1626_v17 = vpack.c.bf16 %v1625_v15, %v1623_v14 }
 0x1bb   :  { %2936 = vmatmul.mubr.msk.bf16.vlgmr.msra.gmra.mrb[4].mxu0 %vm1021_vm12, %v1031_v53  ;;  %2948 = vmatmul.mubr.msk.bf16.vlgmr.msra.gmra.mrb[4].mxu1 %vm1021_vm12, %v1036_v47 }
 0x1bc   :  { %2952 = vmatpush3.bf16.msra.mxu0 %v1232_v54  ;;  %2958 = vmatpush3.bf16.msra.mxu1 %v1232_v54 }
 0x1bd   :  { %2953 = vmatprep.mubr.msk.bf16.mxu0 %vm3438_vm7, %v3437_v0  ;;  %2959 = vmatprep.mubr.msk.bf16.mxu1 %vm3438_vm7, %v3437_v0 }
 0x1be   :  { %2963 = vmatprep.subr.bf16.mxu0 %v3437_v0  ;;  %2969 = vmatprep.subr.bf16.mxu1 %v3437_v0 }
 0x1c7   :  { %2954 = vmatmul.mubr.msk.bf16.vlgmr.msra.gmra.mrb[4].mxu0 %vm1021_vm12, %v1043_v49  ;;  %2960 = vmatmul.mubr.msk.bf16.vlgmr.msra.gmra.mrb[4].mxu1 %vm1021_vm12, %v1230_v58  ;;  %v1749_v49 = vrot.slane %v1719_v22, %v1016_v24 }
 0x1c8   :  { %2964 = vmatpush3.bf16.msra.mxu0 %v1331_v59  ;;  %2970 = vmatpush3.bf16.msra.mxu1 %v1331_v59 }
 0x1c9   :  { %2965 = vmatprep.mubr.msk.bf16.mxu0 %vm3438_vm7, %v3437_v0  ;;  %2971 = vmatprep.mubr.msk.bf16.mxu1 %vm3438_vm7, %v3437_v0 }
 0x1ca   :  { %2975 = vmatprep.subr.bf16.mxu0 %v3437_v0  ;;  %2981 = vmatprep.subr.bf16.mxu1 %v3437_v0 }
 0x1d3   :  { %2966 = vmatmul.mubr.msk.bf16.vlgmr.msra.gmra.mrb[4].mxu0 %vm1021_vm12, %v1230_v58  ;;  %2972 = vmatmul.mubr.msk.bf16.vlgmr.msra.gmra.mrb[4].mxu1 %vm1021_vm12, %v1329_v2 }
 0x1d4   :  { %2976 = vmatpush3.bf16.msra.mxu0 %v1430_v3  ;;  %2982 = vmatpush3.bf16.msra.mxu1 %v1430_v3 }
 0x1d5   :  { %2977 = vmatprep.mubr.msk.bf16.mxu0 %vm3438_vm7, %v3437_v0  ;;  %2983 = vmatprep.mubr.msk.bf16.mxu1 %vm3438_vm7, %v3437_v0 }
 0x1d6   :  { %2987 = vmatprep.subr.bf16.mxu0 %v3437_v0  ;;  %2993 = vmatprep.subr.bf16.mxu1 %v3437_v0 }
 0x1df   :  { %2978 = vmatmul.mubr.msk.bf16.vlgmr.msra.gmra.mrb[4].mxu0 %vm1021_vm12, %v1329_v2  ;;  %2984 = vmatmul.mubr.msk.bf16.vlgmr.msra.gmra.mrb[4].mxu1 %vm1021_vm12, %v1428_v7 }
 0x1e0   :  { %2988 = vmatpush3.bf16.msra.mxu0 %v1529_v8  ;;  %2994 = vmatpush3.bf16.msra.mxu1 %v1529_v8 }
 0x1e1   :  { %2989 = vmatprep.mubr.msk.bf16.mxu0 %vm3438_vm7, %v3437_v0  ;;  %2995 = vmatprep.mubr.msk.bf16.mxu1 %vm3438_vm7, %v3437_v0 }
 0x1e2   :  { %2999 = vmatprep.subr.bf16.mxu0 %v3437_v0  ;;  %3005 = vmatprep.subr.bf16.mxu1 %v3437_v0 }
 0x1eb   :  { %2990 = vmatmul.mubr.msk.bf16.vlgmr.msra.gmra.mrb[4].mxu0 %vm1021_vm12, %v1428_v7  ;;  %2996 = vmatmul.mubr.msk.bf16.vlgmr.msra.gmra.mrb[4].mxu1 %vm1021_vm12, %v1527_v12 }
 0x1ec   :  { %3000 = vmatpush3.bf16.msra.mxu0 %v1628_v13  ;;  %3006 = vmatpush3.bf16.msra.mxu1 %v1628_v13 }
 0x1ed   :  { %3001 = vmatprep.mubr.msk.bf16.mxu0 %vm3438_vm7, %v3437_v0  ;;  %3007 = vmatprep.mubr.msk.bf16.mxu1 %vm3438_vm7, %v3437_v0 }
 0x1ee   :  { %3017 = vmatprep.subr.bf16.mxu1 %v3437_v0  ;;  %3011 = vmatprep.subr.bf16.mxu0 %v3437_v0 }
 0x1f7   :  { %3002 = vmatmul.mubr.msk.bf16.vlgmr.msra.gmra.mrb[4].mxu0 %vm1021_vm12, %v1527_v12  ;;  %3008 = vmatmul.mubr.msk.bf16.vlgmr.msra.gmra.mrb[4].mxu1 %vm1021_vm12, %v1626_v17 }
 0x1f8   :  { %3018 = vmatpush3.bf16.msra.mxu1 %v3753_v16  ;;  %3021 = vmatprep.mubr.msk.bf16.mxu1 %vm3438_vm7, %v3437_v0 }
 0x1f9   :  { %3019 = vmatprep.subr.bf16.mxu1 %v3437_v0  ;;  %3013 = vmatprep.mubr.msk.bf16.mxu0 %vm3438_vm7, %v3437_v0 }
 0x1fa   :  { %3012 = vmatpush3.bf16.msra.mxu0 %v3223_v20 }
 0x1fb   :  { %3025 = vmatprep.subr.bf16.mxu0 %v3437_v0 }
 0x1fc   :  { %3020 = vmatpush3.bf16.msra.mxu1 %v3761_v18 }
 0x1fd   :  { %3033 = vmatprep.subr.bf16.mxu1 %v3437_v0 }
 0x1ff   :  { %3022 = vmatmul.mubr.bf16.vlgmr.msra.gmra.mrb[8].mxu1 %v3439_v19 }
 0x200   :  { %3034 = vmatpush3.bf16.msra.mxu1 %v3753_v16  ;;  %3037 = vmatprep.mubr.msk.bf16.mxu1 %vm3438_vm7, %v3437_v0 }
 0x201   :  { %3035 = vmatprep.subr.bf16.mxu1 %v3437_v0 }
 0x204   :  { %3036 = vmatpush3.bf16.msra.mxu1 %v3761_v18 }
 0x205   :  { %3049 = vmatprep.subr.bf16.mxu1 %v3437_v0 }
 0x213   :  { %v3785_v58 = vpop.permute.xlu0 %1893 }
 0x2ca   :  { %v1664_v26 = vpop.f32.mrb[4].mxu0  ;;  %v1710_v27 = vpop.f32.mrb[4].mxu1 }
 0x2cb   :  { %v1720_v28 = vmax.f32 %v1664_v26, %v1710_v27  ;;  %v3003_v29 = vpop.f32.mrb[5].mxu0  ;;  %v3009_v30 = vpop.f32.mrb[5].mxu1 }
 0x2cc   :  { %v1667_v31 = vpop.f32.mrb[6].mxu0  ;;  %v1713_v32 = vpop.f32.mrb[6].mxu1 }
 0x2cd   :  { %v1726_v33 = vadd.f32 %v1725_v25, %v1720_v28  ;;  %v1721_v34 = vmax.f32 %v1667_v31, %v1713_v32  ;;  %v3004_v35 = vpop.f32.mrb[7].mxu0  ;;  %v3010_v36 = vpop.f32.mrb[7].mxu1 }
 0x2cf   :  { %v1730_v37 = vmin.f32 %v1726_v33, 0.0  ;;  %v1727_v38 = vadd.f32 %v1725_v25, %v1721_v34  ;;  %vm1728_vm14 = vcmp.gt.f32.partialorder %v1726_v33, 0.0 }
 0x2d1   :  { %v1732_v39 = vmul.f32 1.442695, %v1730_v37  ;;  %v1731_v40 = vmin.f32 %v1727_v38, 0.0  ;;  %vm1729_vm15 = vcmp.gt.f32.partialorder %v1727_v38, 0.0 }
 0x2d2   :  { %v1880_v41 = vpop.f32.mrb[8].mxu1 }
 0x2d3   :  { %3236 = vpow2.f32 %v1732_v39  ;;  %v1734_v42 = vmul.f32 1.442695, %v1731_v40  ;;  %v3023_v43 = vpop.f32.mrb[9].mxu1  ;;  %v1896_v59 = vadd.f32 %v3785_v58, %v1880_v41 }
 0x2d4   :  { %v1883_v63 = vpop.f32.mrb[10].mxu1 }
 0x2d5   :  { %3238 = vpow2.f32 %v1734_v42  ;;  %v3024_v44 = vpop.f32.mrb[11].mxu1  ;;  %1898 = vrot.lane.b32.xlu0 %v1896_v59, %s3430_s2 }
 0x2dd   :  { %v3237_v45 = vpop.eup %3236 }
 0x2de   :  { %v2700_v47 = vadd.f32 -1.0, %v3237_v45 }
 0x2df   :  { %v3239_v48 = vpop.eup %3238 }
 0x2e0   :  { %v1738_v50 = vsel %vm1728_vm14, %v1726_v33, %v2700_v47  ;;  %v2701_v51 = vadd.f32 -1.0, %v3239_v48 }
 0x2e1   :  { %v1744_v52 = vmul.f32 %v1743_v46, %v1738_v50 }
 0x2e2   :  { %v1739_v53 = vsel %vm1729_vm15, %v1727_v38, %v2701_v51 }
 0x2e3   :  { %v1750_v54 = vadd.f32 %v1749_v49, %v1744_v52  ;;  %v1745_v55 = vmul.f32 %v1743_v46, %v1739_v53 }
 0x2e5   :  { %v1752_v56 = vpack.c.bf16 %v1750_v54, %v1750_v54  ;;  %v1751_v57 = vadd.f32 %v1749_v49, %v1745_v55 }
 0x2e7   :  { %1754 = vst.msk [vmem:[#allocation4] sm:$0x3] %vm1753_vm0, %v1752_v56  ;;  %v2736_v23 = vpack.c.bf16 %v1751_v57, %v1751_v57 }
 0x2e9   :  { %v1759_v60 = vrot.slane %v2736_v23, 6 }
 0x2eb   :  { %1762 = vst.msk [vmem:[#allocation4] sm:$0xc] %vm1761_vm1, %v1759_v60 }
 0x2f2   :  { %v1768_v62 = vld [vmem:[#allocation4] sm:$0xf] }
 0x2f3   :  { %3014 = vmatmul.mubr.msk.bf16.vlgmr.msra.gmra.mrb[8].mxu0 %vm1783_vm2, %v1768_v62 }
 0x2f4   :  { %3026 = vmatpush3.bf16.msra.mxu0 %v3753_v16  ;;  %3029 = vmatprep.mubr.msk.bf16.mxu0 %vm3438_vm7, %v3437_v0 }
 0x2f5   :  { %3027 = vmatprep.subr.bf16.mxu0 %v3437_v0 }
 0x2f8   :  { %3028 = vmatpush3.bf16.msra.mxu0 %v3761_v18 }
 0x2f9   :  { %3041 = vmatprep.subr.bf16.mxu0 %v3437_v0 }
 0x347   :  { %v1899_v9 = vpop.permute.xlu0 %1898 }
 0x3c6   :  { %v1821_v24 = vpop.f32.mrb[8].mxu0 }
 0x3c7   :  { %v1822_v61 = vadd.f32 %v2703_v21, %v1821_v24  ;;  %v3015_v1 = vpop.f32.mrb[9].mxu0 }
 0x3c8   :  { %v1824_v2 = vpop.f32.mrb[10].mxu0 }
 0x3c9   :  { %1828 = vst.msk [vmem:[#allocation5] sm:$0xff] %vm1827_vm3, %v1822_v61  ;;  %v3016_v3 = vpop.f32.mrb[11].mxu0 }
 0x3d0   :  { %v1829_v4 = vld [vmem:[#allocation5] ss:$4 sm:$0x3]  ;;  %v1926_v32 = vld [vmem:[#allocation5 + $0x1] ss:$4 sm:$0x3] }
 0x3d1   :  { %v1886_v5 = vadd.f32 %v1880_v41, %v1829_v4  ;;  %v2010_v52 = vld [vmem:[#allocation5 + $0x2] ss:$4 sm:$0x3] }
 0x3d3   :  { %v2708_v6 = vmul.f32 -1.442695, %v1886_v5 }
 0x3d5   :  { %3240 = vpow2.f32 %v2708_v6 }
 0x3df   :  { %v3241_v7 = vpop.eup %3240 }
 0x3e0   :  { %v1890_v8 = vadd.f32 1.0, %v3241_v7 }
 0x3e2   :  { %3242 = vrcp.f32 %v1890_v8 }
 0x3ec   :  { %v3243_v10 = vpop.eup %3242 }
 0x3ed   :  { %v1901_v11 = vmul.f32 %v3243_v10, %v1899_v9  ;;  %v1908_v15 = vsub.f32 1.0, %v3243_v10  ;;  %v1914_v20 = vmul.f32 0.0, %v3243_v10 }
 0x3ef   :  { %1903 = vrot.lane.b32.xlu1 %v1901_v11, %s3430_s2 }
 0x461   :  { %v1904_v12 = vpop.permute.xlu1 %1903 }
 0x462   :  { %v1906_v13 = vadd.f32 %v1904_v12, %v1829_v4  ;;  %v2094_v12 = vld [vmem:[#allocation5 + $0x3] ss:$4 sm:$0x3] }
 0x464   :  { %3244 = vtanh.f32 %v1906_v13 }
 0x46e   :  { %v3245_v14 = vpop.eup %3244 }
 0x46f   :  { %1910 = vrot.lane.b32.xlu1 %v3245_v14, %s3440_s6 }
 0x4e1   :  { %v1911_v17 = vpop.permute.xlu1 %1910 }
 0x4e2   :  { %v1913_v21 = vmul.f32 %v1911_v17, %v1908_v15 }
 0x4e4   :  { %v1915_v22 = vadd.f32 %v1914_v20, %v1913_v21 }
 0x4e6   :  { %v3798_v25 = vpack.c.bf16 %v1915_v22, %v1915_v22 }
 0x4e8   :  { %1927 = vrot.lane.b32.xlu0 %v3798_v25, %s3440_s6 }
 0x55a   :  { %v1928_v26 = vpop.permute.xlu0 %1927 }
 0x55b   :  { %3030 = vmatmul.mubr.msk.bf16.vlgmr.msra.gmra.mrb[12].mxu0 %vm1842_vm4, %v1928_v26 }
 0x55c   :  { %3042 = vmatpush3.bf16.msra.mxu0 %v3753_v16  ;;  %3045 = vmatprep.mubr.msk.bf16.mxu0 %vm3438_vm7, %v3437_v0 }
 0x55d   :  { %3043 = vmatprep.subr.bf16.mxu0 %v3437_v0 }
 0x560   :  { %3044 = vmatpush3.bf16.msra.mxu0 %v3761_v18 }
 0x561   :  { %3057 = vmatprep.subr.bf16.mxu0 %v3437_v0 }
 0x62e   :  { %v1966_v27 = vpop.f32.mrb[12].mxu0 }
 0x62f   :  { %v3031_v28 = vpop.f32.mrb[13].mxu0  ;;  %v1979_v29 = vadd.f32 %v1966_v27, %v3785_v58  ;;  %v1972_v33 = vadd.f32 %v1966_v27, %v1926_v32 }
 0x630   :  { %v1969_v30 = vpop.f32.mrb[14].mxu0 }
 0x631   :  { %1981 = vrot.lane.b32.xlu1 %v1979_v29, %s3430_s2  ;;  %v3032_v31 = vpop.f32.mrb[15].mxu0  ;;  %v2711_v16 = vmul.f32 -1.442695, %v1972_v33  ;;  %v3837_v30 = vld [vmem:[%s3943_s9] sm:$0xff]  }
 0x632   :  { %v3226_v33 = vld [vmem:[%s3942_s8] sm:$0xff]  }
 0x633   :  { %3246 = vpow2.f32 %v2711_v16 }
 0x63d   :  { %v3247_v34 = vpop.eup %3246 }
 0x63e   :  { %v1976_v35 = vadd.f32 1.0, %v3247_v34 }
 0x640   :  { %3248 = vrcp.f32 %v1976_v35 }
 0x64a   :  { %v3249_v36 = vpop.eup %3248 }
 0x64b   :  { %v1991_v41 = vsub.f32 1.0, %v3249_v36  ;;  %v1997_v43 = vmul.f32 %v3249_v36, %v1915_v22 }
 0x6a3   :  { %v1982_v37 = vpop.permute.xlu1 %1981 }
 0x6a4   :  { %v1984_v18 = vmul.f32 %v3249_v36, %v1982_v37 }
 0x6a6   :  { %1986 = vrot.lane.b32.xlu0 %v1984_v18, %s3430_s2 }
 0x718   :  { %v1987_v38 = vpop.permute.xlu0 %1986 }
 0x719   :  { %v1989_v39 = vadd.f32 %v1987_v38, %v1926_v32  ;;  %v2719_v38 = vld [vmem:[%s3944_s10] ss:$0 sm:$0xff] }
 0x71b   :  { %3250 = vtanh.f32 %v1989_v39 }
 0x725   :  { %v3251_v40 = vpop.eup %3250 }
 0x726   :  { %1993 = vrot.lane.b32.xlu1 %v3251_v40, %s3440_s6 }
 0x798   :  { %v1994_v42 = vpop.permute.xlu1 %1993 }
 0x799   :  { %v1996_v63 = vmul.f32 %v1994_v42, %v1991_v41 }
 0x79b   :  { %v1998_v44 = vadd.f32 %v1997_v43, %v1996_v63 }
 0x79d   :  { %v3813_v45 = vpack.c.bf16 %v1998_v44, %v1998_v44 }
 0x79f   :  { %2011 = vrot.lane.b32.xlu0 %v3813_v45, %s3440_s6  ;;  %v2003_v32 = vrot.slane %v3813_v45, 7 }
 0x811   :  { %v2012_v46 = vpop.permute.xlu0 %2011 }
 0x812   :  { %3038 = vmatmul.mubr.msk.bf16.vlgmr.msra.gmra.mrb[12].mxu1 %vm1842_vm4, %v2012_v46 }
 0x813   :  { %3053 = vmatprep.mubr.msk.bf16.mxu1 %vm3438_vm7, %v3437_v0  ;;  %3050 = vmatpush3.bf16.msra.mxu1 %v3226_v33 }
 0x814   :  { %3051 = vmatprep.subr.bf16.mxu1 %v3437_v0 }
 0x8e5   :  { %v2050_v47 = vpop.f32.mrb[12].mxu1 }
 0x8e6   :  { %v3039_v48 = vpop.f32.mrb[13].mxu1  ;;  %v2063_v49 = vadd.f32 %v2050_v47, %v3785_v58  ;;  %v2056_v53 = vadd.f32 %v2050_v47, %v2010_v52 }
 0x8e7   :  { %v2053_v50 = vpop.f32.mrb[14].mxu1 }
 0x8e8   :  { %2065 = vrot.lane.b32.xlu1 %v2063_v49, %s3430_s2  ;;  %v3040_v51 = vpop.f32.mrb[15].mxu1  ;;  %v2714_v54 = vmul.f32 -1.442695, %v2056_v53 }
 0x8ea   :  { %3252 = vpow2.f32 %v2714_v54 }
 0x8f4   :  { %v3253_v55 = vpop.eup %3252 }
 0x8f5   :  { %v2060_v56 = vadd.f32 1.0, %v3253_v55 }
 0x8f7   :  { %3254 = vrcp.f32 %v2060_v56 }
 0x901   :  { %v3255_v57 = vpop.eup %3254 }
 0x902   :  { %v2075_v61 = vsub.f32 1.0, %v3255_v57  ;;  %v2081_v2 = vmul.f32 %v3255_v57, %v1998_v44 }
 0x95a   :  { %v2066_v23 = vpop.permute.xlu1 %2065 }
 0x95b   :  { %v2068_v59 = vmul.f32 %v3255_v57, %v2066_v23 }
 0x95d   :  { %2070 = vrot.lane.b32.xlu0 %v2068_v59, %s3430_s2 }
 0x9cf   :  { %v2071_v60 = vpop.permute.xlu0 %2070 }
 0x9d0   :  { %v2073_v62 = vadd.f32 %v2071_v60, %v2010_v52 }
 0x9d2   :  { %3256 = vtanh.f32 %v2073_v62 }
 0x9dc   :  { %v3257_v24 = vpop.eup %3256 }
 0x9dd   :  { %2077 = vrot.lane.b32.xlu1 %v3257_v24, %s3440_s6 }
 0xa4f   :  { %v2078_v1 = vpop.permute.xlu1 %2077 }
 0xa50   :  { %v2080_v3 = vmul.f32 %v2078_v1, %v2075_v61 }
 0xa52   :  { %v2082_v4 = vadd.f32 %v2081_v2, %v2080_v3 }
 0xa54   :  { %v2083_v5 = vpack.c.bf16 %v2082_v4, %v2082_v4 }
 0xa56   :  { %2095 = vrot.lane.b32.xlu0 %v2083_v5, %s3440_s6 }
 0xac8   :  { %v2096_v6 = vpop.permute.xlu0 %2095 }
 0xac9   :  { %3046 = vmatmul.mubr.msk.bf16.vlgmr.msra.gmra.mrb[16].mxu0 %vm1842_vm4, %v2096_v6 }
 0xaca   :  { %3061 = vmatprep.mubr.msk.bf16.mxu0 %vm3438_vm7, %v3437_v0  ;;  %3058 = vmatpush3.bf16.msra.mxu0 %v3837_v30 }
 0xacb   :  { %3059 = vmatprep.subr.bf16.mxu0 %v3437_v0 }
 0xb9c   :  { %v2134_v7 = vpop.f32.mrb[16].mxu0 }
 0xb9d   :  { %v3047_v8 = vpop.f32.mrb[17].mxu0  ;;  %v2147_v9 = vadd.f32 %v2134_v7, %v3785_v58  ;;  %v2140_v13 = vadd.f32 %v2134_v7, %v2094_v12  ;;  %v2087_v58 = vrot.slane %v2083_v5, 6 }
 0xb9e   :  { %v2137_v10 = vpop.f32.mrb[18].mxu0 }
 0xb9f   :  { %2149 = vrot.lane.b32.xlu1 %v2147_v9, %s3430_s2  ;;  %v3048_v11 = vpop.f32.mrb[19].mxu0  ;;  %v2717_v14 = vmul.f32 -1.442695, %v2140_v13 }
 0xba1   :  { %3258 = vpow2.f32 %v2717_v14 }
 0xbab   :  { %v3259_v15 = vpop.eup %3258 }
 0xbac   :  { %v2144_v17 = vadd.f32 1.0, %v3259_v15 }
 0xbae   :  { %3260 = vrcp.f32 %v2144_v17 }
 0xbb8   :  { %v3261_v20 = vpop.eup %3260 }
 0xbb9   :  { %v2159_v16 = vsub.f32 1.0, %v3261_v20  ;;  %v2165_v35 = vmul.f32 %v3261_v20, %v2082_v4 }
 0xc11   :  { %v2150_v21 = vpop.permute.xlu1 %2149 }
 0xc12   :  { %v2152_v22 = vmul.f32 %v3261_v20, %v2150_v21 }
 0xc14   :  { %2154 = vrot.lane.b32.xlu0 %v2152_v22, %s3430_s2 }
 0xc18   :  { %1920 = vrot.lane.b32.xlu0 %v3798_v25, %s3440_s6  ;;  %v3843_v25 = vld [vmem:[%s3943_s9 + $0x8] sm:$0xff]  }
 0xc19   :  { %3060 = vmatpush3.bf16.msra.mxu0 %v3843_v25 }
 0xc1a   :  { %3073 = vmatprep.subr.bf16.mxu0 %v3437_v0 }
 0xc1c   :  { %2088 = vrot.lane.b32.xlu0 %v2087_v58, %s3440_s6  ;;  %3062 = vmatmul.mubr.bf16.vlgmr.msra.gmra.mrb[20].mxu0 %v3439_v19  ;;  %v3227_v19 = vld [vmem:[%s3942_s8 + $0x8] sm:$0xff]  }
 0xc1d   :  { %3074 = vmatpush3.bf16.msra.mxu0 %v3837_v30  ;;  %3077 = vmatprep.mubr.msk.bf16.mxu0 %vm3438_vm7, %v3437_v0 }
 0xc1e   :  { %3075 = vmatprep.subr.bf16.mxu0 %v3437_v0  ;;  %3052 = vmatpush3.bf16.msra.mxu1 %v3227_v19 }
 0xc1f   :  { %3065 = vmatprep.subr.bf16.mxu1 %v3437_v0 }
 0xc20   :  { %2309 = vrot.lane.b32.xlu0 %v2719_v38, %s3440_s6 }
 0xc21   :  { %3076 = vmatpush3.bf16.msra.mxu0 %v3843_v25 }
 0xc22   :  { %3089 = vmatprep.subr.bf16.mxu0 %v3437_v0 }
 0xc86   :  { %v2155_v26 = vpop.permute.xlu0 %2154 }
 0xc87   :  { %v2157_v27 = vadd.f32 %v2155_v26, %v2094_v12 }
 0xc89   :  { %3262 = vtanh.f32 %v2157_v27 }
 0xc8a   :  { %v1921_v28 = vpop.permute.xlu0 %1920 }
 0xc8b   :  { %1924 = vst.msk [vmem:[#allocation6] sm:$0x1] %vm1923_vm5, %v1921_v28 }
 0xc8e   :  { %v2089_v29 = vpop.permute.xlu0 %2088 }
 0xc8f   :  { %2092 = vst.msk [vmem:[#allocation6] sm:$0x4] %vm2091_vm6, %v2089_v29 }
 0xc92   :  { %v3871_v44 = vpop.permute.xlu0 %2309 }
 0xc93   :  { %v3263_v31 = vpop.eup %3262 }
 0xc94   :  { %2161 = vrot.lane.b32.xlu1 %v3263_v31, %s3440_s6 }
 0xc98   :  { %2004 = vrot.lane.b32.xlu1 %v2003_v32, %s3440_s6 }
 0xcef   :  { %v2296_v41 = vpop.f32.mrb[20].mxu0 }
 0xcf0   :  { %v3063_v42 = vpop.f32.mrb[21].mxu0  ;;  %v2312_v45 = vadd.f32 %v3871_v44, %v2296_v41 }
 0xcf1   :  { %v2299_v43 = vpop.f32.mrb[22].mxu0 }
 0xcf2   :  { %v3064_v63 = vpop.f32.mrb[23].mxu0 }
 0xd06   :  { %v2162_v34 = vpop.permute.xlu1 %2161 }
 0xd07   :  { %v2164_v36 = vmul.f32 %v2162_v34, %v2159_v16 }
 0xd09   :  { %v2166_v37 = vadd.f32 %v2165_v35, %v2164_v36 }
 0xd0a   :  { %v2005_v18 = vpop.permute.xlu1 %2004 }
 0xd0b   :  { %v2740_v39 = vpack.c.bf16 %v2166_v37, %v2166_v37  ;;  %2008 = vst.msk [vmem:[#allocation6] sm:$0x2] %vm2007_vm8, %v2005_v18 }
 0xd0d   :  { %v2171_v40 = vrot.slane %v2740_v39, 5 }
 0xd0f   :  { %2172 = vrot.lane.b32.xlu1 %v2171_v40, %s3440_s6 }
 0xd13   :  { %2314 = vrot.lane.b32.xlu1 %v2312_v45, %s3430_s2 }
 0xd81   :  { %v2173_v46 = vpop.permute.xlu1 %2172 }
 0xd82   :  { %2176 = vst.msk [vmem:[#allocation6] sm:$0x8] %vm2175_vm9, %v2173_v46 }
 0xd85   :  { %v2315_v23 = vpop.permute.xlu1 %2314 }
 0xd89   :  { %v2182_v47 = vld [vmem:[#allocation6] sm:$0xf] }
 0xd8a   :  { %3054 = vmatmul.mubr.msk.bf16.vlgmr.msra.gmra.mrb[16].mxu1 %vm1842_vm4, %v2182_v47 }
 0xd8b   :  { %3066 = vmatpush3.bf16.msra.mxu1 %v3837_v30  ;;  %3069 = vmatprep.mubr.msk.bf16.mxu1 %vm3438_vm7, %v3437_v0 }
 0xd8c   :  { %3067 = vmatprep.subr.bf16.mxu1 %v3437_v0 }
 0xd8f   :  { %3068 = vmatpush3.bf16.msra.mxu1 %v3843_v25 }
 0xd90   :  { %3081 = vmatprep.subr.bf16.mxu1 %v3437_v0 }
 0xe5d   :  { %v2242_v48 = vpop.f32.mrb[16].mxu1 }
 0xe5e   :  { %v2243_v49 = vadd.f32 %v2719_v38, %v2242_v48  ;;  %v3055_v50 = vpop.f32.mrb[17].mxu1 }
 0xe5f   :  { %v2245_v51 = vpop.f32.mrb[18].mxu1 }
 0xe60   :  { %2248 = vst.msk [vmem:[#allocation5] sm:$0xff] %vm1827_vm3, %v2243_v49  ;;  %v3056_v52 = vpop.f32.mrb[19].mxu1 }
 0xe67   :  { %v2249_v53 = vld [vmem:[#allocation5] sm:$0x3]  ;;  %v2332_v13 = vld [vmem:[#allocation5 + $0x2] sm:$0x3]  ;;  %v2407_v18 = vld [vmem:[#allocation5 + $0x4] sm:$0x3] }
 0xe68   :  { %v2302_v54 = vadd.f32 %v2296_v41, %v2249_v53 }
 0xe6a   :  { %v2725_v55 = vmul.f32 -1.442695, %v2302_v54 }
 0xe6c   :  { %3264 = vpow2.f32 %v2725_v55 }
 0xe76   :  { %v3265_v56 = vpop.eup %3264 }
 0xe77   :  { %v2306_v57 = vadd.f32 1.0, %v3265_v56 }
 0xe79   :  { %3266 = vrcp.f32 %v2306_v57 }
 0xe83   :  { %v3267_v59 = vpop.eup %3266 }
 0xe84   :  { %v2317_v60 = vmul.f32 %v3267_v59, %v2315_v23  ;;  %v2324_v1 = vsub.f32 1.0, %v3267_v59  ;;  %v2330_v3 = vmul.f32 0.0, %v3267_v59 }
 0xe86   :  { %2319 = vrot.lane.b32.xlu0 %v2317_v60, %s3430_s2  ;;  %v2482_v60 = vld [vmem:[#allocation5 + $0x6] sm:$0x3] }
 0xef8   :  { %v2320_v62 = vpop.permute.xlu0 %2319 }
 0xef9   :  { %v2322_v24 = vadd.f32 %v2320_v62, %v2249_v53 }
 0xefb   :  { %3268 = vtanh.f32 %v2322_v24 }
 0xf05   :  { %v3269_v61 = vpop.eup %3268 }
 0xf06   :  { %2326 = vrot.lane.b32.xlu1 %v3269_v61, %s3440_s6 }
 0xf78   :  { %v2327_v2 = vpop.permute.xlu1 %2326 }
 0xf79   :  { %v2329_v4 = vmul.f32 %v2327_v2, %v2324_v1 }
 0xf7b   :  { %v2331_v5 = vadd.f32 %v2330_v3, %v2329_v4 }
 0xf7d   :  { %v2333_v6 = vpack.c.bf16 %v2331_v5, %v2331_v5 }
 0xf7f   :  { %2335 = vrot.lane.b32.xlu0 %v2333_v6, %s3440_s6 }
 0xff1   :  { %v2336_v7 = vpop.permute.xlu0 %2335 }
 0xff2   :  { %3070 = vmatmul.mubr.msk.bf16.vlgmr.msra.gmra.mrb[20].mxu1 %vm1842_vm4, %v2336_v7  ;;  %v3229_v7 = vld [vmem:[%s3945_s11 + $0x8] sm:$0xff]  }
 0xff3   :  { %3082 = vmatpush3.bf16.msra.mxu1 %v3837_v30  ;;  %3085 = vmatprep.mubr.msk.bf16.mxu1 %vm3438_vm7, %v3437_v0 }
 0xff4   :  { %3083 = vmatprep.subr.bf16.mxu1 %v3437_v0 }
 0xff7   :  { %3084 = vmatpush3.bf16.msra.mxu1 %v3843_v25 }
0x10c5   :  { %v2374_v8 = vpop.f32.mrb[20].mxu1 }
0x10c6   :  { %v3071_v9 = vpop.f32.mrb[21].mxu1  ;;  %v2387_v10 = vadd.f32 %v2374_v8, %v3871_v44  ;;  %v2380_v14 = vadd.f32 %v2374_v8, %v2332_v13 }
0x10c7   :  { %v2377_v11 = vpop.f32.mrb[22].mxu1 }
0x10c8   :  { %2389 = vrot.lane.b32.xlu1 %v2387_v10, %s3430_s2  ;;  %v3072_v12 = vpop.f32.mrb[23].mxu1  ;;  %v2727_v15 = vmul.f32 -1.442695, %v2380_v14 }
0x10ca   :  { %3270 = vpow2.f32 %v2727_v15 }
0x10d4   :  { %v3271_v17 = vpop.eup %3270 }
0x10d5   :  { %v2384_v20 = vadd.f32 1.0, %v3271_v17 }
0x10d7   :  { %3272 = vrcp.f32 %v2384_v20 }
0x10e1   :  { %v3273_v21 = vpop.eup %3272 }
0x10e2   :  { %v2399_v29 = vsub.f32 1.0, %v3273_v21  ;;  %v2405_v25 = vmul.f32 %v3273_v21, %v2331_v5 }
0x113a   :  { %v2390_v22 = vpop.permute.xlu1 %2389 }
0x113b   :  { %v2392_v58 = vmul.f32 %v3273_v21, %v2390_v22 }
0x113d   :  { %2394 = vrot.lane.b32.xlu0 %v2392_v58, %s3430_s2 }
0x11af   :  { %v2395_v26 = vpop.permute.xlu0 %2394 }
0x11b0   :  { %v2397_v27 = vadd.f32 %v2395_v26, %v2332_v13 }
0x11b2   :  { %3274 = vtanh.f32 %v2397_v27 }
0x11bc   :  { %v3275_v28 = vpop.eup %3274 }
0x11bd   :  { %2401 = vrot.lane.b32.xlu1 %v3275_v28, %s3440_s6 }
0x122f   :  { %v2402_v30 = vpop.permute.xlu1 %2401 }
0x1230   :  { %v2404_v31 = vmul.f32 %v2402_v30, %v2399_v29 }
0x1232   :  { %v2406_v32 = vadd.f32 %v2405_v25, %v2404_v31 }
0x1234   :  { %v2408_v33 = vpack.c.bf16 %v2406_v32, %v2406_v32 }
0x1236   :  { %2410 = vrot.lane.b32.xlu0 %v2408_v33, %s3440_s6 }
0x12a8   :  { %v2411_v19 = vpop.permute.xlu0 %2410 }
0x12a9   :  { %3078 = vmatmul.mubr.msk.bf16.vlgmr.msra.gmra.mrb[24].mxu0 %vm1842_vm4, %v2411_v19 }
0x12aa   :  { %3093 = vmatprep.mubr.msk.bf16.mxu0 %vm3438_vm7, %v3437_v0  ;;  %vm2628_vm7 = vcmask 25600  }
0x137c   :  { %v2449_v16 = vpop.f32.mrb[24].mxu0 }
0x137d   :  { %v3079_v34 = vpop.f32.mrb[25].mxu0  ;;  %v2462_v35 = vadd.f32 %v2449_v16, %v3871_v44  ;;  %v2455_v38 = vadd.f32 %v2449_v16, %v2407_v18 }
0x137e   :  { %v2452_v36 = vpop.f32.mrb[26].mxu0 }
0x137f   :  { %2464 = vrot.lane.b32.xlu1 %v2462_v35, %s3430_s2  ;;  %v3080_v37 = vpop.f32.mrb[27].mxu0  ;;  %v2729_v39 = vmul.f32 -1.442695, %v2455_v38 }
0x1381   :  { %3276 = vpow2.f32 %v2729_v39 }
0x138b   :  { %v3277_v40 = vpop.eup %3276 }
0x138c   :  { %v2459_v41 = vadd.f32 1.0, %v3277_v40 }
0x138e   :  { %3278 = vrcp.f32 %v2459_v41 }
0x1398   :  { %v3279_v42 = vpop.eup %3278 }
0x1399   :  { %v2474_v48 = vsub.f32 1.0, %v3279_v42  ;;  %v2480_v50 = vmul.f32 %v3279_v42, %v2406_v32 }
0x13f1   :  { %v2465_v43 = vpop.permute.xlu1 %2464 }
0x13f2   :  { %v2467_v63 = vmul.f32 %v3279_v42, %v2465_v43 }
0x13f4   :  { %2469 = vrot.lane.b32.xlu0 %v2467_v63, %s3430_s2 }
0x1466   :  { %v2470_v45 = vpop.permute.xlu0 %2469 }
0x1467   :  { %v2472_v46 = vadd.f32 %v2470_v45, %v2407_v18 }
0x1469   :  { %3280 = vtanh.f32 %v2472_v46 }
0x1473   :  { %v3281_v47 = vpop.eup %3280 }
0x1474   :  { %2476 = vrot.lane.b32.xlu1 %v3281_v47, %s3440_s6 }
0x14e6   :  { %v2477_v49 = vpop.permute.xlu1 %2476 }
0x14e7   :  { %v2479_v51 = vmul.f32 %v2477_v49, %v2474_v48 }
0x14e9   :  { %v2481_v52 = vadd.f32 %v2480_v50, %v2479_v51 }
0x14eb   :  { %v2483_v53 = vpack.c.bf16 %v2481_v52, %v2481_v52 }
0x14ed   :  { %2485 = vrot.lane.b32.xlu0 %v2483_v53, %s3440_s6 }
0x155f   :  { %v2486_v54 = vpop.permute.xlu0 %2485 }
0x1560   :  { %3086 = vmatmul.mubr.msk.bf16.vlgmr.msra.gmra.mrb[24].mxu1 %vm1842_vm4, %v2486_v54 }
0x1633   :  { %v2524_v55 = vpop.f32.mrb[24].mxu1 }
0x1634   :  { %v3087_v56 = vpop.f32.mrb[25].mxu1  ;;  %v2537_v57 = vadd.f32 %v2524_v55, %v3871_v44  ;;  %v2530_v62 = vadd.f32 %v2524_v55, %v2482_v60  ;;  %v3228_v44 = vld [vmem:[%s3945_s11] sm:$0xff]  }
0x1635   :  { %v2527_v23 = vpop.f32.mrb[26].mxu1  ;;  %3090 = vmatpush3.bf16.msra.mxu0 %v3228_v44 }
0x1636   :  { %2539 = vrot.lane.b32.xlu1 %v2537_v57, %s3430_s2  ;;  %v3088_v59 = vpop.f32.mrb[27].mxu1  ;;  %v2731_v24 = vmul.f32 -1.442695, %v2530_v62  ;;  %3091 = vmatprep.subr.bf16.mxu0 %v3437_v0  ;;  %v2732_v0 = vld [vmem:[%s3946_s12] ss:$0 sm:$0xff] }
0x1638   :  { %3282 = vpow2.f32 %v2731_v24 }
0x1639   :  { %3092 = vmatpush3.bf16.msra.mxu0 %v3229_v7 }
0x1642   :  { %v3283_v61 = vpop.eup %3282 }
0x1643   :  { %v2534_v1 = vadd.f32 1.0, %v3283_v61 }
0x1645   :  { %3284 = vrcp.f32 %v2534_v1 }
0x164f   :  { %v3285_v2 = vpop.eup %3284 }
0x1650   :  { %v2549_v9 = vsub.f32 1.0, %v3285_v2  ;;  %v2555_v11 = vmul.f32 %v3285_v2, %v2481_v52 }
0x16a8   :  { %v2540_v3 = vpop.permute.xlu1 %2539 }
0x16a9   :  { %v2542_v4 = vmul.f32 %v3285_v2, %v2540_v3 }
0x16ab   :  { %2544 = vrot.lane.b32.xlu0 %v2542_v4, %s3430_s2 }
0x171d   :  { %v2545_v5 = vpop.permute.xlu0 %2544 }
0x171e   :  { %v2547_v6 = vadd.f32 %v2545_v5, %v2482_v60 }
0x1720   :  { %3286 = vtanh.f32 %v2547_v6 }
0x172a   :  { %v3287_v8 = vpop.eup %3286 }
0x172b   :  { %2551 = vrot.lane.b32.xlu1 %v3287_v8, %s3440_s6 }
0x179d   :  { %v2552_v10 = vpop.permute.xlu1 %2551 }
0x179e   :  { %v2554_v12 = vmul.f32 %v2552_v10, %v2549_v9 }
0x17a0   :  { %v2556_v13 = vadd.f32 %v2555_v11, %v2554_v12 }
0x17a2   :  { %v2557_v14 = vmax.f32 %v2556_v13, 0.0 }
0x17a4   :  { %v2558_v15 = vpack.c.bf16 %v2557_v14, %v2557_v14 }
0x17a6   :  { %2571 = vrot.lane.b32.xlu0 %v2558_v15, %s3440_s6 }
0x1818   :  { %v2572_v17 = vpop.permute.xlu0 %2571 }
0x1819   :  { %3094 = vmatmul.mubr.msk.bf16.vlgmr.msra.gmra.mrb[28].mxu0 %vm1842_vm4, %v2572_v17 }
0x18ec   :  { %v2622_v20 = vpop.f32.mrb[28].mxu0 }
0x18ed   :  { %v2623_v21 = vadd.f32 %v2732_v0, %v2622_v20  ;;  %v3095_v22 = vpop.f32.mrb[29].mxu0 }
0x18ee   :  { %v2625_v58 = vpop.f32.mrb[30].mxu0 }
0x18ef   :  { %v3096_v26 = vpop.f32.mrb[31].mxu0  ;;  %2629 = vst.msk [vmem:[#allocation16] sm:$0x3] %vm2628_vm7, %v2623_v21 }
0x18f0   :  { %3409 = shalt.err (!%p3406_p2)
}
0x18f1   :  { %s3410_s12 = scalar_lea.hbm %s3947_s13, 32 }
0x18f2   :  { %p3411_p3 = scmp.ne.s32.totalorder %s3947_s13, %s3410_s12  ;;  %p3414_p4 = scmp.lt.u32.totalorder %s3410_s12, %s3947_s13 }
0x18f4   :  { %p3416_p5 = pnand %p3414_p4, %p3411_p3 }
0x18f6   :  { %3419 = shalt.err (!%p3416_p5)
}
0x18f7   :  { %2639 = dma.vmem_to_hbm [thread:$0]  %s2637_s30, 32, %s3947_s13, [#allocation9]  }
0x18f8   :  { %3426 = dma.done.wait [#allocation9], 32  }
0x18f9   :  { %3427 = vsyncadd [#allocation9], 4294967264 }
0x18fa   :  { %2643 = vsyncpa [#allocation8], 1 }
0x18fb   :  { %2644 = vsyncpa [#allocation11], 1 }
0x18fc   :  { %2645 = vsyncpa [#allocation14], 1 }
0x18fd   :  { %2646 = vsyncpa [#allocation9], 1 }

</bundles_post_ra>
